<compile_context>
chip_gen: v6e
topology: v6e:2x2x1
jax: 0.10.0
libtpu: 0.0.40
codegen_flags: <defaults>
</compile_context>

<pallas_src>
import functools

import jax
import jax.numpy as jnp
from jax.experimental import pallas as pl
from jax.experimental.pallas import tpu as pltpu


# ------------------------- model configuration -------------------------------
EMBED_SIZES = {'grade': 3, 'purpose': 5, 'home_ownership': 2, 'term': 1}   # embed dim
EMBED_DIMS = {'grade': 7, 'purpose': 14, 'home_ownership': 4, 'term': 2}   # vocab size
EMBED_KEYS = ['grade', 'purpose', 'home_ownership', 'term']

INPUT_FLOAT_DIM = 16
HIDDEN_DIM = 32
SUB_HIDDEN_DIM = HIDDEN_DIM // 2
EMBED_TOTAL = sum(EMBED_SIZES[k] for k in EMBED_KEYS)        # 11 (concat embed width)

VOCAB_SIZES = tuple(EMBED_DIMS[k] for k in EMBED_KEYS)       # (7, 14, 4, 2)
TOTAL_VOCAB = sum(VOCAB_SIZES)                               # 27
_offs, _acc = [], 0
for _v in VOCAB_SIZES:
    _offs.append(_acc)
    _acc += _v
VOCAB_OFFSETS = tuple(_offs)                                 # (0, 7, 21, 25)

MAX_BLOCK_COLS = 2048        # big tiles: per-grid-step overhead dominates otherwise


# ------------------------------ Pallas kernel ---------------------------------
def _multinet_kernel(n_valid, block_cols, offsets, total_vocab, apply_mask,
                     xf_ref, xe_ref, yret_ref,
                     w1_ref, b1_ref, w2f_ref, w2e_ref, b2_ref,
                     w3_ref, b3_ref, w4_ref, b4_ref,
                     ret_ref, loss_ref):
    """Batch-on-lanes (transposed) forward for one batch tile of `block_cols` rows."""
    step = pl.program_id(0)

    # ---- linear1 + relu:  h1 = relu(W1^T @ xf^T + b1)      (H, TB) ----
    h1 = jnp.dot(w1_ref[...], xf_ref[...], preferred_element_type=jnp.float32)
    h1 = jnp.maximum(h1 + b1_ref[...], 0.0)

    # ---- multi-hot for all 4 embedding keys, built directly in bf16 ----
    # Category ranges are disjoint, so an OR of the 4 compares is the multi-hot.
    xe = xe_ref[...]                                               # (K, TB) int32
    iota = jax.lax.broadcasted_iota(jnp.int32, (total_vocab, block_cols), 0)
    hot = iota == (xe[0:1, :] + offsets[0])
    for k in range(1, len(offsets)):
        hot = jnp.logical_or(hot, iota == (xe[k:k + 1, :] + offsets[k]))
    onehot = hot.astype(jnp.bfloat16)                              # (27, TB)

    # ---- linear2 on concat([float_hid, embed_hid]) as two matmuls ----
    h2 = jnp.dot(w2f_ref[...], h1.astype(jnp.bfloat16),
                 preferred_element_type=jnp.float32)
    h2 = h2 + jnp.dot(w2e_ref[...], onehot, preferred_element_type=jnp.float32)
    h2 = jnp.maximum(h2 + b2_ref[...], 0.0)                        # (H, TB)

    # ---- linear3 + relu ----
    h3 = jnp.dot(w3_ref[...], h2.astype(jnp.bfloat16),
                 preferred_element_type=jnp.float32)
    h3 = jnp.maximum(h3 + b3_ref[...], 0.0)                        # (H/2, TB)

    # ---- linear4_1 (out dim 1): VPU mul + sublane (XLU) reduce, no MXU pass ----
    ret = jnp.sum(h3 * w4_ref[...], axis=0, keepdims=True) + b4_ref[...]   # (1, TB)
    ret_ref[...] = ret                                             # lane-dense store

    # ---- per-block squared-error partial sum (padded rows masked out) ----
    diff = ret - yret_ref[...]
    if apply_mask:
        col = step * block_cols + jax.lax.broadcasted_iota(
            jnp.int32, (1, block_cols), 1)
        diff = jnp.where(col < n_valid, diff, 0.0)
    part = jnp.sum(diff * diff, keepdims=True)                     # (1, 1)
    loss_ref[...] = jnp.broadcast_to(part, (1, 128))               # lane-dense store


# ---------------------- one-time parameter preprocessing ----------------------
def prepare_params(params):
    """Hoist all per-call prep out of the forward: W2 split, table@W2e fusion,
    transposes for the batch-on-lanes layout, bias reshapes, bf16 casts."""
    esz = [EMBED_SIZES[k] for k in EMBED_KEYS]
    w2 = params['w2']
    w2f = w2[:HIDDEN_DIM, :]

    fused = []
    off = HIDDEN_DIM
    for i, s in enumerate(esz):
        # (vocab_i, esz_i) @ (esz_i, H) -> (vocab_i, H), computed in f32.
        fused.append(params['tables'][i] @ w2[off:off + s, :])
        off += s
    w2e_fused = jnp.concatenate(fused, axis=0)                     # (27, H)

    return {
        'w1T': params['w1'].T.astype(jnp.bfloat16),                # (H, F)
        'b1': params['b1'].reshape(-1, 1).astype(jnp.float32),     # (H, 1)
        'w2fT': w2f.T.astype(jnp.bfloat16),                        # (H, H)
        'w2eT': w2e_fused.T.astype(jnp.bfloat16),                  # (H, 27)
        'b2': params['b2'].reshape(-1, 1).astype(jnp.float32),     # (H, 1)
        'w3T': params['w3'].T.astype(jnp.bfloat16),                # (H/2, H)
        'b3': params['b3'].reshape(-1, 1).astype(jnp.float32),     # (H/2, 1)
        'w4': params['w4'].reshape(-1, 1).astype(jnp.float32),     # (H/2, 1)
        'b4': params['b4'].reshape(1, 1).astype(jnp.float32),      # (1, 1)
    }


# ------------------------------- wrapper ---------------------------------------
def multinet_forward(X_float, X_embed, batch_label, batch_ret, prepared,
                     block_rows=None):
    """Mirrors MultiNet.forward; batch_label is accepted but unused (as in torch)."""
    del batch_label  # unused by the reference forward computation

    n = X_float.shape[0]
    if block_rows is None:
        # Big tiles (up to 2048 rows) to amortize per-grid-step overhead, but
        # never pad a small batch past the next multiple of 128.
        block_rows = max(128, min(MAX_BLOCK_COLS, ((n + 127) // 128) * 128))

    pad = (-n) % block_rows
    padded_n = n + pad
    num_blocks = padded_n // block_rows

    # Batch-on-lanes: ship everything transposed; cast X_float to bf16 ONCE here.
    xfT = X_float.astype(jnp.bfloat16).T                 # (F, n)
    xeT = X_embed.astype(jnp.int32).T                    # (K, n)
    yrT = batch_ret.astype(jnp.float32).reshape(1, n)    # (1, n)
    if pad:
        xfT = jnp.pad(xfT, ((0, 0), (0, pad)))
        xeT = jnp.pad(xeT, ((0, 0), (0, pad)))           # index 0 is in-range -> safe
        yrT = jnp.pad(yrT, ((0, 0), (0, pad)))

    weights = (prepared['w1T'], prepared['b1'], prepared['w2fT'],
               prepared['w2eT'], prepared['b2'], prepared['w3T'],
               prepared['b3'], prepared['w4'], prepared['b4'])

    kernel = functools.partial(
        _multinet_kernel, n, block_rows, VOCAB_OFFSETS, TOTAL_VOCAB, pad > 0)

    def col_spec(rows):
        return pl.BlockSpec((rows, block_rows), lambda i: (0, i))

    def resident(arr):
        return pl.BlockSpec(arr.shape, lambda i: (0, 0))

    retT, loss_parts = pl.pallas_call(
        kernel,
        grid=(num_blocks,),
        in_specs=[col_spec(xfT.shape[0]),
                  col_spec(xeT.shape[0]),
                  col_spec(1)] + [resident(w) for w in weights],
        out_specs=(pl.BlockSpec((1, block_rows), lambda i: (0, i)),
                   pl.BlockSpec((1, 128), lambda i: (0, i))),
        out_shape=(jax.ShapeDtypeStruct((1, padded_n), jnp.float32),
                   jax.ShapeDtypeStruct((1, 128 * num_blocks), jnp.float32)),
        compiler_params=pltpu.CompilerParams(
            # No carried state across batch tiles -> the grid axis is parallel
            # (lets v7x shard batch tiles across both TensorCores).
            dimension_semantics=("parallel",)),
    )(xfT, xeT, yrT, *weights)

    ret = retT[0, :n].reshape(n, 1)
    # Each block broadcast its partial sum across 128 lanes; take lane 0 per block.
    loss = loss_parts.reshape(num_blocks, 128)[:, 0].sum() * jnp.float32(1.0 / n)
    return loss, ret


# ------------------------- deterministic parameter init ------------------------
def init_params(key):
    keys = jax.random.split(key, 16)
    scale = 0.1
    params = {
        'w1': scale * jax.random.normal(keys[0], (INPUT_FLOAT_DIM, HIDDEN_DIM), jnp.float32),
        'b1': scale * jax.random.normal(keys[1], (HIDDEN_DIM,), jnp.float32),
        'w2': scale * jax.random.normal(keys[2], (HIDDEN_DIM + EMBED_TOTAL, HIDDEN_DIM), jnp.float32),
        'b2': scale * jax.random.normal(keys[3], (HIDDEN_DIM,), jnp.float32),
        'w3': scale * jax.random.normal(keys[4], (HIDDEN_DIM, SUB_HIDDEN_DIM), jnp.float32),
        'b3': scale * jax.random.normal(keys[5], (SUB_HIDDEN_DIM,), jnp.float32),
        'w4': scale * jax.random.normal(keys[6], (SUB_HIDDEN_DIM, 1), jnp.float32),
        'b4': scale * jax.random.normal(keys[7], (1,), jnp.float32),
        'tables': [
            scale * jax.random.normal(keys[8 + i],
                                      (EMBED_DIMS[k], EMBED_SIZES[k]),
                                      jnp.float32)
            for i, k in enumerate(EMBED_KEYS)
        ],
    }
    return params


# ------------------------------ pure-JAX reference ------------------------------
def reference_forward(X_float, X_embed, batch_ret, params):
    h1 = jax.nn.relu(X_float @ params['w1'] + params['b1'])
    embs = [params['tables'][i][X_embed[:, i]] for i in range(len(EMBED_KEYS))]
    hid = jnp.concatenate([h1] + embs, axis=1)
    h2 = jax.nn.relu(hid @ params['w2'] + params['b2'])
    h3 = jax.nn.relu(h2 @ params['w3'] + params['b3'])
    ret = h3 @ params['w4'] + params['b4']
    loss = jnp.mean((ret - batch_ret) ** 2)
    return loss, ret


# ------------------------------------ main --------------------------------------
if __name__ == "__main__":
    root = jax.random.PRNGKey(0)
    k_param, k_xf, k_xe, k_lbl, k_ret = jax.random.split(root, 5)

    params = init_params(k_param)
    prepared = prepare_params(params)            # one-time, hoisted out of forward

    N = 1024                                      # many rows per launch (amortized)
    X_float = jax.random.normal(k_xf, (N, INPUT_FLOAT_DIM), jnp.float32)
    X_embed = jnp.stack(
        [jax.random.randint(jax.random.fold_in(k_xe, i), (N,), 0, EMBED_DIMS[k])
         for i, k in enumerate(EMBED_KEYS)],
        axis=1).astype(jnp.int32)                 # (N, num_keys)
    batch_label = jax.random.randint(k_lbl, (N,), 0, 2)   # unused in forward
    batch_ret = jax.random.normal(k_ret, (N, 1), jnp.float32)

    fwd = jax.jit(multinet_forward)
    loss, ret = fwd(X_float, X_embed, batch_label, batch_ret, prepared)
    jax.block_until_ready((loss, ret))

    ref_loss, ref_ret = reference_forward(X_float, X_embed, batch_ret, params)
    # bf16 MXU operands (f32 accumulation) -> slightly relaxed tolerance vs f32 ref.
    assert jnp.allclose(ret, ref_ret, atol=3e-2, rtol=3e-2), "ret mismatch vs reference"
    assert jnp.allclose(loss, ref_loss, atol=3e-2, rtol=3e-2), "loss mismatch vs reference"

    print("KERNEL_OK")
</pallas_src>

<mosaic_0001>
module attributes {stable_mosaic.version = 11 : i64} {
  func.func @_multinet_kernel(%arg0: i32, %arg1: memref<16x1024xbf16, #tpu.memory_space<vmem>>, %arg2: memref<4x1024xi32, #tpu.memory_space<vmem>>, %arg3: memref<1x1024xf32, #tpu.memory_space<vmem>>, %arg4: memref<32x16xbf16, #tpu.memory_space<vmem>>, %arg5: memref<32x1xf32, #tpu.memory_space<vmem>>, %arg6: memref<32x32xbf16, #tpu.memory_space<vmem>>, %arg7: memref<32x27xbf16, #tpu.memory_space<vmem>>, %arg8: memref<32x1xf32, #tpu.memory_space<vmem>>, %arg9: memref<16x32xbf16, #tpu.memory_space<vmem>>, %arg10: memref<16x1xf32, #tpu.memory_space<vmem>>, %arg11: memref<16x1xf32, #tpu.memory_space<vmem>>, %arg12: memref<1x1xf32, #tpu.memory_space<vmem>>, %arg13: memref<1x1024xf32, #tpu.memory_space<vmem>>, %arg14: memref<1x128xf32, #tpu.memory_space<vmem>>) attributes {dimension_semantics = [#tpu.dimension_semantics<parallel>], iteration_bounds = array<i64: 1>, scalar_prefetch = 0 : i64, scratch_operands = 0 : i64, tpu.core_type = #tpu.core_type<tc>, window_params = [{transform_indices = @transform_0, window_bounds = array<i64: 16, 1024>}, {transform_indices = @transform_1, window_bounds = array<i64: 4, 1024>}, {transform_indices = @transform_2, window_bounds = array<i64: 1, 1024>}, {pipeline_mode = #tpu.pipeline_mode<synchronous>, transform_indices = @transform_3, window_bounds = array<i64: 32, 16>}, {pipeline_mode = #tpu.pipeline_mode<synchronous>, transform_indices = @transform_4, window_bounds = array<i64: 32, 1>}, {pipeline_mode = #tpu.pipeline_mode<synchronous>, transform_indices = @transform_5, window_bounds = array<i64: 32, 32>}, {pipeline_mode = #tpu.pipeline_mode<synchronous>, transform_indices = @transform_6, window_bounds = array<i64: 32, 27>}, {pipeline_mode = #tpu.pipeline_mode<synchronous>, transform_indices = @transform_7, window_bounds = array<i64: 32, 1>}, {pipeline_mode = #tpu.pipeline_mode<synchronous>, transform_indices = @transform_8, window_bounds = array<i64: 16, 32>}, {pipeline_mode = #tpu.pipeline_mode<synchronous>, transform_indices = @transform_9, window_bounds = array<i64: 16, 1>}, {pipeline_mode = #tpu.pipeline_mode<synchronous>, transform_indices = @transform_10, window_bounds = array<i64: 16, 1>}, {pipeline_mode = #tpu.pipeline_mode<synchronous>, transform_indices = @transform_11, window_bounds = array<i64: 1, 1>}, {transform_indices = @transform_12, window_bounds = array<i64: 1, 1024>}, {transform_indices = @transform_13, window_bounds = array<i64: 1, 128>}]} {
    %c0 = arith.constant 0 : index
    %c0_0 = arith.constant 0 : index
    %0 = vector.load %arg4[%c0, %c0_0] : memref<32x16xbf16, #tpu.memory_space<vmem>>, vector<32x16xbf16>
    %c0_1 = arith.constant 0 : index
    %c0_2 = arith.constant 0 : index
    %1 = vector.load %arg1[%c0_1, %c0_2] : memref<16x1024xbf16, #tpu.memory_space<vmem>>, vector<16x1024xbf16>
    %cst = arith.constant dense<0.000000e+00> : vector<32x1024xf32>
    %2 = tpu.matmul %0, %1, %cst {dimension_numbers = #tpu.dot_dimension_numbers<[1], [0], [0], [1], [0, 0, 1, 1], [], []>} : vector<32x16xbf16>, vector<16x1024xbf16>, vector<32x1024xf32> -> vector<32x1024xf32>
    %c0_3 = arith.constant 0 : index
    %c0_4 = arith.constant 0 : index
    %3 = vector.load %arg5[%c0_3, %c0_4] : memref<32x1xf32, #tpu.memory_space<vmem>>, vector<32x1xf32>
    %4 = vector.broadcast %3 : vector<32x1xf32> to vector<32x1024xf32>
    %5 = arith.addf %2, %4 : vector<32x1024xf32>
    %cst_5 = arith.constant 0.000000e+00 : f32
    %6 = vector.broadcast %cst_5 : f32 to vector<32x1024xf32>
    %7 = arith.maximumf %5, %6 : vector<32x1024xf32>
    %c0_6 = arith.constant 0 : index
    %c0_7 = arith.constant 0 : index
    %8 = vector.load %arg2[%c0_6, %c0_7] : memref<4x1024xi32, #tpu.memory_space<vmem>>, vector<4x1024xi32>
    %9 = tpu.iota {dimensions = array<i32: 0>} : vector<27x1024xi32>
    %10 = vector.extract_strided_slice %8 {offsets = [0, 0], sizes = [1, 1024], strides = [1, 1]} : vector<4x1024xi32> to vector<1x1024xi32>
    %c0_i32 = arith.constant 0 : i32
    %11 = vector.broadcast %c0_i32 : i32 to vector<1x1024xi32>
    %12 = arith.addi %10, %11 : vector<1x1024xi32>
    %13 = vector.broadcast %12 : vector<1x1024xi32> to vector<27x1024xi32>
    %14 = arith.cmpi eq, %9, %13 : vector<27x1024xi32>
    %15 = vector.extract_strided_slice %8 {offsets = [1, 0], sizes = [1, 1024], strides = [1, 1]} : vector<4x1024xi32> to vector<1x1024xi32>
    %c7_i32 = arith.constant 7 : i32
    %16 = vector.broadcast %c7_i32 : i32 to vector<1x1024xi32>
    %17 = arith.addi %15, %16 : vector<1x1024xi32>
    %18 = vector.broadcast %17 : vector<1x1024xi32> to vector<27x1024xi32>
    %19 = arith.cmpi eq, %9, %18 : vector<27x1024xi32>
    %20 = arith.ori %14, %19 : vector<27x1024xi1>
    %21 = vector.extract_strided_slice %8 {offsets = [2, 0], sizes = [1, 1024], strides = [1, 1]} : vector<4x1024xi32> to vector<1x1024xi32>
    %c21_i32 = arith.constant 21 : i32
    %22 = vector.broadcast %c21_i32 : i32 to vector<1x1024xi32>
    %23 = arith.addi %21, %22 : vector<1x1024xi32>
    %24 = vector.broadcast %23 : vector<1x1024xi32> to vector<27x1024xi32>
    %25 = arith.cmpi eq, %9, %24 : vector<27x1024xi32>
    %26 = arith.ori %20, %25 : vector<27x1024xi1>
    %27 = vector.extract_strided_slice %8 {offsets = [3, 0], sizes = [1, 1024], strides = [1, 1]} : vector<4x1024xi32> to vector<1x1024xi32>
    %c25_i32 = arith.constant 25 : i32
    %28 = vector.broadcast %c25_i32 : i32 to vector<1x1024xi32>
    %29 = arith.addi %27, %28 : vector<1x1024xi32>
    %30 = vector.broadcast %29 : vector<1x1024xi32> to vector<27x1024xi32>
    %31 = arith.cmpi eq, %9, %30 : vector<27x1024xi32>
    %32 = arith.ori %26, %31 : vector<27x1024xi1>
    %33 = arith.extui %32 : vector<27x1024xi1> to vector<27x1024xi32>
    %34 = arith.sitofp %33 : vector<27x1024xi32> to vector<27x1024xf32>
    %35 = arith.truncf %34 : vector<27x1024xf32> to vector<27x1024xbf16>
    %c0_8 = arith.constant 0 : index
    %c0_9 = arith.constant 0 : index
    %36 = vector.load %arg6[%c0_8, %c0_9] : memref<32x32xbf16, #tpu.memory_space<vmem>>, vector<32x32xbf16>
    %37 = arith.truncf %7 : vector<32x1024xf32> to vector<32x1024xbf16>
    %cst_10 = arith.constant dense<0.000000e+00> : vector<32x1024xf32>
    %38 = tpu.matmul %36, %37, %cst_10 {dimension_numbers = #tpu.dot_dimension_numbers<[1], [0], [0], [1], [0, 0, 1, 1], [], []>} : vector<32x32xbf16>, vector<32x1024xbf16>, vector<32x1024xf32> -> vector<32x1024xf32>
    %c0_11 = arith.constant 0 : index
    %c0_12 = arith.constant 0 : index
    %39 = vector.load %arg7[%c0_11, %c0_12] : memref<32x27xbf16, #tpu.memory_space<vmem>>, vector<32x27xbf16>
    %cst_13 = arith.constant dense<0.000000e+00> : vector<32x1024xf32>
    %40 = tpu.matmul %39, %35, %cst_13 {dimension_numbers = #tpu.dot_dimension_numbers<[1], [0], [0], [1], [0, 0, 1, 1], [], []>} : vector<32x27xbf16>, vector<27x1024xbf16>, vector<32x1024xf32> -> vector<32x1024xf32>
    %41 = arith.addf %38, %40 : vector<32x1024xf32>
    %c0_14 = arith.constant 0 : index
    %c0_15 = arith.constant 0 : index
    %42 = vector.load %arg8[%c0_14, %c0_15] : memref<32x1xf32, #tpu.memory_space<vmem>>, vector<32x1xf32>
    %43 = vector.broadcast %42 : vector<32x1xf32> to vector<32x1024xf32>
    %44 = arith.addf %41, %43 : vector<32x1024xf32>
    %cst_16 = arith.constant 0.000000e+00 : f32
    %45 = vector.broadcast %cst_16 : f32 to vector<32x1024xf32>
    %46 = arith.maximumf %44, %45 : vector<32x1024xf32>
    %c0_17 = arith.constant 0 : index
    %c0_18 = arith.constant 0 : index
    %47 = vector.load %arg9[%c0_17, %c0_18] : memref<16x32xbf16, #tpu.memory_space<vmem>>, vector<16x32xbf16>
    %48 = arith.truncf %46 : vector<32x1024xf32> to vector<32x1024xbf16>
    %cst_19 = arith.constant dense<0.000000e+00> : vector<16x1024xf32>
    %49 = tpu.matmul %47, %48, %cst_19 {dimension_numbers = #tpu.dot_dimension_numbers<[1], [0], [0], [1], [0, 0, 1, 1], [], []>} : vector<16x32xbf16>, vector<32x1024xbf16>, vector<16x1024xf32> -> vector<16x1024xf32>
    %c0_20 = arith.constant 0 : index
    %c0_21 = arith.constant 0 : index
    %50 = vector.load %arg10[%c0_20, %c0_21] : memref<16x1xf32, #tpu.memory_space<vmem>>, vector<16x1xf32>
    %51 = vector.broadcast %50 : vector<16x1xf32> to vector<16x1024xf32>
    %52 = arith.addf %49, %51 : vector<16x1024xf32>
    %cst_22 = arith.constant 0.000000e+00 : f32
    %53 = vector.broadcast %cst_22 : f32 to vector<16x1024xf32>
    %54 = arith.maximumf %52, %53 : vector<16x1024xf32>
    %c0_23 = arith.constant 0 : index
    %c0_24 = arith.constant 0 : index
    %55 = vector.load %arg11[%c0_23, %c0_24] : memref<16x1xf32, #tpu.memory_space<vmem>>, vector<16x1xf32>
    %56 = vector.broadcast %55 : vector<16x1xf32> to vector<16x1024xf32>
    %57 = arith.mulf %54, %56 : vector<16x1024xf32>
    %cst_25 = arith.constant dense<0.000000e+00> : vector<1024xf32>
    %58 = vector.multi_reduction <add>, %57, %cst_25 [0] : vector<16x1024xf32> to vector<1024xf32>
    %59 = vector.shape_cast %58 : vector<1024xf32> to vector<1x1024xf32>
    %c0_26 = arith.constant 0 : index
    %c0_27 = arith.constant 0 : index
    %60 = vector.load %arg12[%c0_26, %c0_27] : memref<1x1xf32, #tpu.memory_space<vmem>>, vector<1x1xf32>
    %61 = vector.broadcast %60 : vector<1x1xf32> to vector<1x1024xf32>
    %62 = arith.addf %59, %61 : vector<1x1024xf32>
    %c0_28 = arith.constant 0 : index
    %c0_29 = arith.constant 0 : index
    %63 = vector.load %arg13[%c0_28, %c0_29] : memref<1x1024xf32, #tpu.memory_space<vmem>>, vector<1x1024xf32>
    tpu.vector_store %arg13[%c0_28, %c0_29], %62 {strides = array<i32>} : memref<1x1024xf32, #tpu.memory_space<vmem>>, vector<1x1024xf32>,
    %c0_30 = arith.constant 0 : index
    %c0_31 = arith.constant 0 : index
    %64 = vector.load %arg3[%c0_30, %c0_31] : memref<1x1024xf32, #tpu.memory_space<vmem>>, vector<1x1024xf32>
    %65 = arith.subf %62, %64 : vector<1x1024xf32>
    %66 = arith.mulf %65, %65 : vector<1x1024xf32>
    %67 = vector.shape_cast %66 : vector<1x1024xf32> to vector<1x1x1024xf32>
    %cst_32 = arith.constant dense<0.000000e+00> : vector<1xf32>
    %68 = vector.multi_reduction <add>, %67, %cst_32 [1, 2] : vector<1x1x1024xf32> to vector<1xf32>
    %69 = vector.shape_cast %68 : vector<1xf32> to vector<1x1x1xf32>
    %70 = vector.extract %69[0, 0, 0] : f32 from vector<1x1x1xf32>
    %71 = vector.broadcast %70 : f32 to vector<1x1xf32>
    %72 = vector.shape_cast %71 : vector<1x1xf32> to vector<1x1xf32>
    %73 = vector.broadcast %72 : vector<1x1xf32> to vector<1x128xf32>
    %c0_33 = arith.constant 0 : index
    %c0_34 = arith.constant 0 : index
    %74 = vector.load %arg14[%c0_33, %c0_34] : memref<1x128xf32, #tpu.memory_space<vmem>>, vector<1x128xf32>
    tpu.vector_store %arg14[%c0_33, %c0_34], %73 {strides = array<i32>} : memref<1x128xf32, #tpu.memory_space<vmem>>, vector<1x128xf32>,
    return
  }
  func.func @transform_0(%arg0: i32) -> (i32, i32) {
    %c0_i32 = arith.constant 0 : i32
    %c0_i32_0 = arith.constant 0 : i32
    return %c0_i32, %arg0 : i32, i32
  }
  func.func @transform_1(%arg0: i32) -> (i32, i32) {
    %c0_i32 = arith.constant 0 : i32
    %c0_i32_0 = arith.constant 0 : i32
    return %c0_i32, %arg0 : i32, i32
  }
  func.func @transform_2(%arg0: i32) -> (i32, i32) {
    %c0_i32 = arith.constant 0 : i32
    %c0_i32_0 = arith.constant 0 : i32
    return %c0_i32, %arg0 : i32, i32
  }
  func.func @transform_3(%arg0: i32) -> (i32, i32) {
    %c0_i32 = arith.constant 0 : i32
    %c0_i32_0 = arith.constant 0 : i32
    %c0_i32_1 = arith.constant 0 : i32
    return %c0_i32, %c0_i32_0 : i32, i32
  }
  func.func @transform_4(%arg0: i32) -> (i32, i32) {
    %c0_i32 = arith.constant 0 : i32
    %c0_i32_0 = arith.constant 0 : i32
    %c0_i32_1 = arith.constant 0 : i32
    return %c0_i32, %c0_i32_0 : i32, i32
  }
  func.func @transform_5(%arg0: i32) -> (i32, i32) {
    %c0_i32 = arith.constant 0 : i32
    %c0_i32_0 = arith.constant 0 : i32
    %c0_i32_1 = arith.constant 0 : i32
    return %c0_i32, %c0_i32_0 : i32, i32
  }
  func.func @transform_6(%arg0: i32) -> (i32, i32) {
    %c0_i32 = arith.constant 0 : i32
    %c0_i32_0 = arith.constant 0 : i32
    %c0_i32_1 = arith.constant 0 : i32
    return %c0_i32, %c0_i32_0 : i32, i32
  }
  func.func @transform_7(%arg0: i32) -> (i32, i32) {
    %c0_i32 = arith.constant 0 : i32
    %c0_i32_0 = arith.constant 0 : i32
    %c0_i32_1 = arith.constant 0 : i32
    return %c0_i32, %c0_i32_0 : i32, i32
  }
  func.func @transform_8(%arg0: i32) -> (i32, i32) {
    %c0_i32 = arith.constant 0 : i32
    %c0_i32_0 = arith.constant 0 : i32
    %c0_i32_1 = arith.constant 0 : i32
    return %c0_i32, %c0_i32_0 : i32, i32
  }
  func.func @transform_9(%arg0: i32) -> (i32, i32) {
    %c0_i32 = arith.constant 0 : i32
    %c0_i32_0 = arith.constant 0 : i32
    %c0_i32_1 = arith.constant 0 : i32
    return %c0_i32, %c0_i32_0 : i32, i32
  }
  func.func @transform_10(%arg0: i32) -> (i32, i32) {
    %c0_i32 = arith.constant 0 : i32
    %c0_i32_0 = arith.constant 0 : i32
    %c0_i32_1 = arith.constant 0 : i32
    return %c0_i32, %c0_i32_0 : i32, i32
  }
  func.func @transform_11(%arg0: i32) -> (i32, i32) {
    %c0_i32 = arith.constant 0 : i32
    %c0_i32_0 = arith.constant 0 : i32
    %c0_i32_1 = arith.constant 0 : i32
    return %c0_i32, %c0_i32_0 : i32, i32
  }
  func.func @transform_12(%arg0: i32) -> (i32, i32) {
    %c0_i32 = arith.constant 0 : i32
    %c0_i32_0 = arith.constant 0 : i32
    return %c0_i32, %arg0 : i32, i32
  }
  func.func @transform_13(%arg0: i32) -> (i32, i32) {
    %c0_i32 = arith.constant 0 : i32
    %c0_i32_0 = arith.constant 0 : i32
    return %c0_i32, %arg0 : i32, i32
  }
}

</mosaic_0001>

<bundles_post_ra>
// kernel: multinet_forward.1
= control target key start
LH: loop header
LB: loop body
LE: loop exit
PB: predicated region body
PF: predicated region fallthrough
CT: control target
= control target key end

     0   :  { %s3282_s0 = inlined_call_operand.vmem [shape: bf16[16,1024], index: 0, kind: input, shape index: {}]   ;;  %s3283_s1 = inlined_call_operand.vmem [shape: s32[4,1024], index: 1, kind: input, shape index: {}]   ;;  %s3284_s2 = inlined_call_operand.vmem [shape: f32[1,1024], index: 2, kind: input, shape index: {}]   ;;  %s3285_s3 = inlined_call_operand.vmem [shape: bf16[32,16], index: 3, kind: input, shape index: {}]   ;;  %s3286_s4 = inlined_call_operand.vmem [shape: f32[32,1], index: 4, kind: input, shape index: {}]   ;;  %s3287_s5 = inlined_call_operand.vmem [shape: bf16[32,32], index: 5, kind: input, shape index: {}]   ;;  %s3288_s6 = inlined_call_operand.vmem [shape: bf16[32,27], index: 6, kind: input, shape index: {}]   ;;  %s3289_s7 = inlined_call_operand.vmem [shape: f32[32,1], index: 7, kind: input, shape index: {}]   ;;  %s3290_s8 = inlined_call_operand.vmem [shape: bf16[16,32], index: 8, kind: input, shape index: {}]   ;;  %s3291_s9 = inlined_call_operand.vmem [shape: f32[16,1], index: 9, kind: input, shape index: {}]   ;;  %s3292_s10 = inlined_call_operand.vmem [shape: f32[16,1], index: 10, kind: input, shape index: {}]   ;;  %s3293_s11 = inlined_call_operand.<no memory space> [shape: f32[1,1], index: 11, kind: input, shape index: {}]   ;;  %s3294_s12 = inlined_call_operand.hbm [shape: f32[1,1024], index: 12, kind: output, shape index: {0}]   ;;  %s3295_s13 = inlined_call_operand.vmem [shape: f32[1,128], index: 13, kind: output, shape index: {1}]  }
   0x1   :  { %v19_v0 = vstv %s3293_s11 }
   0x2   :  { %20 = vst [vmem:[#allocation2] sm:$0x1] %v19_v0 }
   0x3   :  { %v51_v1 = vld [vmem:[%s3282_s0] sm:$0xff]  ;;  %v52_v3 = vld [vmem:[%s3282_s0 + $0x8] sm:$0xff]  ;;  %v388_v4 = vlaneseq  ;;  %v3297_v8 = vmov 0   ;;  %v53_v13 = vld [vmem:[%s3282_s0 + $0x10] sm:$0xff]  ;;  %vm133_vm0 = vcmask 130048   ;;  %vm1006_vm1 = vcmask 1044480  }
   0x4   :  { %v55_v2 = vld [vmem:[%s3282_s0 + $0x20] sm:$0xff]  ;;  %v56_v6 = vld [vmem:[%s3282_s0 + $0x28] sm:$0xff]  ;;  %172 = vmatprep.mubr.bf16.mxu0 %v3297_v8  ;;  %225 = vmatprep.mubr.bf16.mxu1 %v3297_v8  ;;  %v57_v14 = vld [vmem:[%s3282_s0 + $0x30] sm:$0xff] }
   0x5   :  { %v2056_v5 = vcombine.high %v51_v1, %v55_v2  ;;  %v2055_v7 = vcombine.low %v51_v1, %v55_v2  ;;  %v2058_v9 = vcombine.high %v52_v3, %v56_v6  ;;  %v2057_v10 = vcombine.low %v52_v3, %v56_v6  ;;  %2152 = vset.pattern.permute.xlu0 %v3297_v8  ;;  %v2283_v12 = vld [vmem:[%s3285_s3] sm:$0xff]   ;;  %v54_v16 = vld [vmem:[%s3282_s0 + $0x18] sm:$0xff]  ;;  %v61_v18 = vld [vmem:[%s3286_s4 + $0x10] sm:$0xff] }
   0x6   :  { %2153 = vset.pattern.permute.xlu1 %v3297_v8  ;;  %v2278_v11 = vshrl.u32 %v388_v4, 7  ;;  %v2060_v15 = vcombine.high %v53_v13, %v57_v14  ;;  %v58_v17 = vld [vmem:[%s3282_s0 + $0x38] sm:$0xff]  ;;  %v2059_v19 = vcombine.low %v53_v13, %v57_v14  ;;  %75 = vperm.xlu0 %2152, %v61_v18   ;;  %v59_v25 = vld [vmem:[%s3286_s4] sm:$0xff]  ;;  %v2333_v30 = vld [vmem:[%s3285_s3 + $0x8] sm:$0xff]  }
   0x7   :  { %154 = vmatprep.subr.bf16.mxu0 %v2056_v5  ;;  %207 = vmatprep.subr.bf16.mxu1 %v2058_v9  ;;  %v2062_v20 = vcombine.high %v54_v16, %v58_v17  ;;  %v2061_v21 = vcombine.low %v54_v16, %v58_v17  ;;  %v62_v23 = vld [vmem:[%s3286_s4 + $0x18] sm:$0xff]  ;;  %v2338_v31 = vld [vmem:[%s3283_s1] sm:$0xff]  ;;  %v2355_v36 = vld [vmem:[%s3283_s1 + $0x8] sm:$0xff] }
   0x8   :  { %3306 = vst [vmem:[#allocation6_spill] sm:$0xff] %v2278_v11  ;;  %155 = vmatpush1.bf16.msra.mxu0 %v2055_v7  ;;  %208 = vmatpush1.bf16.msra.mxu1 %v2057_v10  ;;  %v2301_v22 = vsub.s32 4, %v2278_v11  ;;  %v2309_v24 = vadd.s32 16, %v2278_v11  ;;  %v2318_v26 = vsub.s32 0, %v2278_v11  ;;  %v2321_v27 = vsub.s32 5, %v2278_v11  ;;  %v1477_v37 = vld [vmem:[%s3289_s7 + $0x10] sm:$0xff] }
   0x9   :  { %260 = vmatprep.subr.bf16.mxu0 %v2060_v15  ;;  %313 = vmatprep.subr.bf16.mxu1 %v2062_v20  ;;  %v2324_v28 = vsub.s32 6, %v2278_v11  ;;  %v2327_v29 = vsub.s32 7, %v2278_v11  ;;  %v2341_v32 = vadd.s32 24, %v2278_v11  ;;  %v2344_v33 = vsub.s32 1, %v2278_v11  ;;  %v60_v42 = vld [vmem:[%s3286_s4 + $0x8] sm:$0xff] }
   0xa   :  { %3307 = vst [vmem:[#allocation7_spill] sm:$0xff] %v2301_v22  ;;  %3308 = vst [vmem:[#allocation8_spill] sm:$0xff] %v2321_v27  ;;  %v2347_v34 = vsub.s32 2, %v2278_v11  ;;  %v2350_v35 = vsub.s32 3, %v2278_v11  ;;  %80 = vperm.xlu0 %2152, %v62_v23   ;;  %v400_v38 = vrot.slane %v2338_v31, %v2301_v22  ;;  %v2363_v39 = vadd.s32 7, %v2338_v31  ;;  %65 = vperm.xlu1 %2153, %v59_v25  }
   0xb   :  { %2063 = vmatmul.mubr.msk.bf16.vlgmr.msra.gmra.mxu0 %vm133_vm0, %v2283_v12  ;;  %2065 = vmatmul.mubr.msk.bf16.vlgmr.msra.gmra.mxu1 %vm133_vm0, %v2283_v12  ;;  %3309 = vst [vmem:[#allocation9_spill] sm:$0xff] %v2324_v28  ;;  %3310 = vst [vmem:[#allocation10_spill] sm:$0xff] %v2327_v29  ;;  %v2366_v40 = vadd.s32 21, %v2338_v31  ;;  %v2369_v41 = vadd.s32 25, %v2338_v31  ;;  %v408_v43 = vrot.slane %v2355_v36, %v2301_v22  ;;  %v2377_v44 = vadd.s32 7, %v2355_v36 }
   0xc   :  { %182 = vmatprep.mubr.bf16.mxu0 %v3297_v8  ;;  %235 = vmatprep.mubr.bf16.mxu1 %v3297_v8  ;;  %3311 = vst [vmem:[#allocation11_spill] sm:$0xff] %v2347_v34  ;;  %3312 = vst [vmem:[#allocation12_spill] sm:$0xff] %v2350_v35  ;;  %v2380_v45 = vadd.s32 21, %v2355_v36  ;;  %v2383_v46 = vadd.s32 25, %v2355_v36  ;;  %v2386_v47 = vrot.slane %v400_v38, %v2318_v26 }
   0xd   :  { %261 = vmatpush1.bf16.msra.mxu0 %v2059_v19  ;;  %314 = vmatpush1.bf16.msra.mxu1 %v2061_v21  ;;  %v500_v48 = vrot.slane %v2363_v39, %v2321_v27  ;;  %v632_v49 = vrot.slane %v2366_v40, %v2324_v28  ;;  %v764_v50 = vrot.slane %v2369_v41, %v2327_v29 }
   0xe   :  { %v2395_v51 = vrot.slane %v408_v43, %v2318_v26  ;;  %v508_v52 = vrot.slane %v2377_v44, %v2321_v27  ;;  %1491 = vperm.xlu0 %2152, %v1477_v37   ;;  %vm474_vm2 = vcmp.eq.s32.totalorder %v2309_v24, %v2386_v47  ;;  %v640_v55 = vrot.slane %v2380_v45, %v2324_v28 }
   0xf   :  { %v2402_v53 = vrot.slane %v500_v48, %v2344_v33  ;;  %v2405_v54 = vrot.slane %v632_v49, %v2347_v34 }
  0x10   :  { %21 = vsyncpa [#allocation4], 0  ;;  %v1475_v56 = vld [vmem:[%s3289_s7] sm:$0xff]  ;;  %70 = vperm.xlu1 %2153, %v60_v42   ;;  %vm482_vm3 = vcmp.eq.s32.totalorder %v2341_v32, %v2386_v47  ;;  %v2417_v57 = vrot.slane %v764_v50, %v2350_v35  ;;  %v772_v58 = vrot.slane %v2383_v46, %v2327_v29  ;;  %v1478_v59 = vld [vmem:[%s3289_s7 + $0x18] sm:$0xff]  ;;  %vm1007_vm9 = vcmask 1045504  }
  0x11   :  { %vm574_vm4 = vcmp.eq.s32.totalorder %v2309_v24, %v2402_v53  ;;  %vm582_vm5 = vcmp.eq.s32.totalorder %v2341_v32, %v2402_v53  ;;  %vm706_vm6 = vcmp.eq.s32.totalorder %v2309_v24, %v2405_v54  ;;  %vm714_vm8 = vcmp.eq.s32.totalorder %v2341_v32, %v2405_v54  ;;  %v1581_v2 = vld [vmem:[%s3291_s9] sm:$0xff]  ;;  %v1476_v5 = vld [vmem:[%s3289_s7 + $0x8] sm:$0xff] }
  0x12   :  { %vm606_vm7 = vmor %vm474_vm2, %vm574_vm4  ;;  %v2184_v60 = vmov 65535   ;;  %v2441_v62 = vrot.slane %v508_v52, %v2344_v33  ;;  %1481 = vperm.xlu0 %2152, %v1475_v56   ;;  %vm838_vm11 = vcmp.eq.s32.totalorder %v2309_v24, %v2417_v57  ;;  %v2449_v63 = vrot.slane %v640_v55, %v2347_v34  ;;  %v1789_v15 = vld [vmem:[%s3292_s10] sm:$0xff]  ;;  %v1582_v18 = vld [vmem:[%s3291_s9 + $0x8] sm:$0xff] }
  0x13   :  { %2064 = vmatmul.mubr.msk.bf16.gmra.mxu0 %vm133_vm0, %v2333_v30  ;;  %2066 = vmatmul.mubr.msk.bf16.gmra.mxu1 %vm133_vm0, %v2333_v30  ;;  %v1008_v61 = vsel %vm1006_vm1, 4294967295, %v2184_v60  ;;  %vm614_vm10 = vmor %vm482_vm3, %vm582_vm5  ;;  %v396_v0 = vrot.slane %v2338_v31, %v2318_v26  ;;  %v496_v1 = vrot.slane %v2363_v39, %v2344_v33  ;;  %vm846_vm13 = vcmp.eq.s32.totalorder %v2341_v32, %v2417_v57  ;;  %v1873_v31 = vld [vmem:[#allocation2] sm:$0x1] }
  0x14   :  { %278 = vmatprep.mubr.bf16.mxu0 %v3297_v8  ;;  %331 = vmatprep.mubr.bf16.mxu1 %v3297_v8  ;;  %vm738_vm12 = vmor %vm606_vm7, %vm706_vm6  ;;  %v2464_v3 = vrot.slane %v772_v58, %v2350_v35  ;;  %v628_v4 = vrot.slane %v2366_v40, %v2347_v34  ;;  %vm476_vm15 = vcmp.eq.s32.totalorder %v2309_v24, %v2395_v51  ;;  %v2479_v6 = vsel %vm1007_vm9, %v1008_v61, 0  ;;  %v2706_v61 = vld [vmem:[%s3283_s1 + $0x18] sm:$0xff] }
  0x15   :  { %1496 = vperm.xlu1 %2153, %v1478_v59   ;;  %vm746_vm14 = vmor %vm614_vm10, %vm714_vm8  ;;  %vm576_vm1 = vcmp.eq.s32.totalorder %v2309_v24, %v2441_v62  ;;  %vm484_vm3 = vcmp.eq.s32.totalorder %v2341_v32, %v2395_v51  ;;  %vm584_vm4 = vcmp.eq.s32.totalorder %v2341_v32, %v2441_v62  ;;  %v760_v7 = vrot.slane %v2369_v41, %v2350_v35 }
  0x16   :  { %vm870_vm2 = vmor %vm738_vm12, %vm838_vm11  ;;  %1585 = vperm.xlu0 %2152, %v1581_v2   ;;  %v2185_v9 = vmov 0.0   ;;  %vm708_vm6 = vcmp.eq.s32.totalorder %v2309_v24, %v2449_v63  ;;  %v2491_v13 = vrot.slane %v396_v0, %v2318_v26  ;;  %v2494_v14 = vrot.slane %v496_v1, %v2344_v33  ;;  %v2724_v0 = vld [vmem:[%s3288_s6] sm:$0xff]  }
  0x17   :  { %vm878_vm5 = vmor %vm746_vm14, %vm846_vm13  ;;  %v2088_v10 = vsel %vm870_vm2, 1.0, %v2185_v9  ;;  %vm716_vm8 = vcmp.eq.s32.totalorder %v2341_v32, %v2449_v63  ;;  %vm840_vm9 = vcmp.eq.s32.totalorder %v2309_v24, %v2464_v3  ;;  %v2513_v17 = vrot.slane %v628_v4, %v2347_v34 }
  0x18   :  { %v2096_v16 = vsel %vm878_vm5, 1.0, %v2185_v9  ;;  %vm608_vm7 = vmor %vm476_vm15, %vm576_vm1  ;;  %v404_v20 = vrot.slane %v2355_v36, %v2318_v26  ;;  %vm848_vm12 = vcmp.eq.s32.totalorder %v2341_v32, %v2464_v3  ;;  %v2538_v21 = vrot.slane %v760_v7, %v2350_v35  ;;  %v1790_v36 = vld [vmem:[%s3292_s10 + $0x8] sm:$0xff] }
  0x19   :  { %1486 = vperm.xlu1 %2153, %v1476_v5   ;;  %v958_v19 = vpack.c.bf16 %v2096_v16, %v2088_v10  ;;  %vm616_vm10 = vmor %vm484_vm3, %vm584_vm4  ;;  %vm473_vm14 = vcmp.eq.s32.totalorder %v2309_v24, %v2491_v13  ;;  %vm573_vm15 = vcmp.eq.s32.totalorder %v2309_v24, %v2494_v14  ;;  %v636_v25 = vrot.slane %v2380_v45, %v2347_v34 }
  0x1a   :  { %vm740_vm11 = vmor %vm608_vm7, %vm708_vm6  ;;  %1793 = vperm.xlu0 %2152, %v1789_v15   ;;  %vm481_vm2 = vcmp.eq.s32.totalorder %v2341_v32, %v2491_v13  ;;  %vm581_vm3 = vcmp.eq.s32.totalorder %v2341_v32, %v2494_v14  ;;  %vm705_vm4 = vcmp.eq.s32.totalorder %v2309_v24, %v2513_v17  ;;  %v2567_v38 = vrot.slane %v404_v20, %v2318_v26 }
  0x1b   :  { %2067 = vmatmul.mubr.msk.bf16.vlgmr.msra.gmra.mxu0 %vm133_vm0, %v2283_v12  ;;  %2069 = vmatmul.mubr.msk.bf16.vlgmr.msra.gmra.mxu1 %vm133_vm0, %v2283_v12  ;;  %v504_v12 = vrot.slane %v2377_v44, %v2344_v33  ;;  %v1014_v23 = vand.u32 %v2479_v6, %v958_v19  ;;  %vm748_vm13 = vmor %vm616_vm10, %vm716_vm8  ;;  %v768_v40 = vrot.slane %v2383_v46, %v2350_v35  ;;  %v2621_v48 = vadd.s32 8, %v2278_v11  ;;  %v2788_v19 = vld [vmem:[%s3288_s6 + $0x8] sm:$0xff]  }
  0x1c   :  { %288 = vmatprep.mubr.bf16.mxu0 %v3297_v8  ;;  %341 = vmatprep.mubr.bf16.mxu1 %v3297_v8  ;;  %vm872_vm1 = vmor %vm740_vm11, %vm840_vm9  ;;  %vm713_vm7 = vcmp.eq.s32.totalorder %v2341_v32, %v2513_v17  ;;  %vm837_vm9 = vcmp.eq.s32.totalorder %v2309_v24, %v2538_v21  ;;  %v2589_v43 = vrot.slane %v636_v25, %v2347_v34  ;;  %v2736_v4 = vadd.s32 21, %v2706_v61 }
  0x1d   :  { %1590 = vperm.xlu1 %2153, %v1582_v18   ;;  %1046 = vmatprep.subr.bf16.mxu0 %v1014_v23  ;;  %vm880_vm5 = vmor %vm748_vm13, %vm848_vm12  ;;  %v2090_v37 = vsel %vm872_vm1, 1.0, %v2185_v9  ;;  %v2570_v39 = vrot.slane %v504_v12, %v2344_v33  ;;  %vm845_vm11 = vcmp.eq.s32.totalorder %v2341_v32, %v2538_v21  ;;  %vm475_vm13 = vcmp.eq.s32.totalorder %v2309_v24, %v2567_v38 }
  0x1e   :  { %v2098_v41 = vsel %vm880_vm5, 1.0, %v2185_v9  ;;  %vm605_vm6 = vmor %vm473_vm14, %vm573_vm15  ;;  %1876 = vperm.xlu0 %2152, %v1873_v31   ;;  %v2606_v45 = vrot.slane %v768_v40, %v2350_v35  ;;  %vm483_vm1 = vcmp.eq.s32.totalorder %v2341_v32, %v2567_v38  ;;  %vm715_vm5 = vcmp.eq.s32.totalorder %v2341_v32, %v2589_v43 }
  0x1f   :  { %v960_v42 = vpack.c.bf16 %v2098_v41, %v2090_v37  ;;  %vm613_vm8 = vmor %vm481_vm2, %vm581_vm3  ;;  %vm575_vm14 = vcmp.eq.s32.totalorder %v2309_v24, %v2570_v39  ;;  %vm583_vm2 = vcmp.eq.s32.totalorder %v2341_v32, %v2570_v39  ;;  %vm707_vm3 = vcmp.eq.s32.totalorder %v2309_v24, %v2589_v43 }
  0x20   :  { %vm737_vm10 = vmor %vm605_vm6, %vm705_vm4  ;;  %v424_v7 = vrot.slane %v2706_v61, %v2301_v22  ;;  %v656_v15 = vrot.slane %v2736_v4, %v2324_v28 }
  0x21   :  { %1798 = vperm.xlu1 %2153, %v1790_v36   ;;  %v1020_v44 = vand.u32 %v2479_v6, %v960_v42  ;;  %vm745_vm12 = vmor %vm613_vm8, %vm713_vm7  ;;  %vm839_vm7 = vcmp.eq.s32.totalorder %v2309_v24, %v2606_v45  ;;  %v420_v42 = vrot.slane %v2706_v61, %v2318_v26 }
  0x22   :  { %vm869_vm15 = vmor %vm737_vm10, %vm837_vm9  ;;  %vm847_vm9 = vcmp.eq.s32.totalorder %v2341_v32, %v2606_v45  ;;  %v2777_v16 = vrot.slane %v424_v7, %v2318_v26  ;;  %v2797_v12 = vrot.slane %v656_v15, %v2347_v34 }
  0x23   :  { %2068 = vmatmul.mubr.msk.bf16.gmra.mxu0 %vm133_vm0, %v2333_v30  ;;  %2070 = vmatmul.mubr.msk.bf16.gmra.mxu1 %vm133_vm0, %v2333_v30  ;;  %vm877_vm0 = vmor %vm745_vm12, %vm845_vm11  ;;  %v2087_v30 = vsel %vm869_vm15, 1.0, %v2185_v9  ;;  %vm458_vm11 = vcmp.eq.s32.totalorder %v2278_v11, %v2386_v47  ;;  %vm558_vm12 = vcmp.eq.s32.totalorder %v2278_v11, %v2402_v53  ;;  %vm566_vm15 = vcmp.eq.s32.totalorder %v2621_v48, %v2402_v53 }
  0x24   :  { %1066 = vmatprep.mubr.bf16.mxu0 %v3297_v8  ;;  %1099 = vmatprep.subr.bf16.mxu1 %v1020_v44  ;;  %v2095_v46 = vsel %vm877_vm0, 1.0, %v2185_v9  ;;  %vm607_vm4 = vmor %vm475_vm13, %vm575_vm14  ;;  %vm466_vm14 = vcmp.eq.s32.totalorder %v2621_v48, %v2386_v47  ;;  %v2186_v53 = vmov 1.0|1.0  }
  0x25   :  { %1119 = vmatprep.mubr.bf16.mxu1 %v3297_v8  ;;  %v957_v49 = vpack.c.bf16 %v2095_v46, %v2087_v30  ;;  %vm615_vm6 = vmor %vm483_vm1, %vm583_vm2  ;;  %vm690_vm2 = vcmp.eq.s32.totalorder %v2278_v11, %v2405_v54  ;;  %v652_v30 = vrot.slane %v2736_v4, %v2347_v34 }
  0x26   :  { %vm739_vm8 = vmor %vm607_vm4, %vm707_vm3  ;;  %vm698_vm3 = vcmp.eq.s32.totalorder %v2621_v48, %v2405_v54 }
  0x27   :  { %v1011_v50 = vand.u32 %v2479_v6, %v957_v49  ;;  %vm747_vm10 = vmor %vm615_vm6, %vm715_vm5  ;;  %vm822_vm5 = vcmp.eq.s32.totalorder %v2278_v11, %v2417_v57 }
  0x28   :  { %vm871_vm13 = vmor %vm739_vm8, %vm839_vm7  ;;  %vm830_vm7 = vcmp.eq.s32.totalorder %v2621_v48, %v2417_v57 }
  0x29   :  { %1047 = vmatpush1.bf16.msra.mxu0 %v1011_v50  ;;  %vm879_vm1 = vmor %vm747_vm10, %vm847_vm9  ;;  %v2089_v52 = vsel %vm871_vm13, 1.0, %v2185_v9  ;;  %vm460_vm10 = vcmp.eq.s32.totalorder %v2278_v11, %v2395_v51  ;;  %vm468_vm13 = vcmp.eq.s32.totalorder %v2621_v48, %v2395_v51  ;;  %v2680_v51 = vld [vmem:[%s3283_s1 + $0x10] sm:$0xff]  ;;  %v2875_v50 = vrot.slane %v420_v42, %v2318_v26 }
  0x2a   :  { %v2097_v55 = vsel %vm879_vm1, 1.0, %v2185_v9  ;;  %vm590_vm0 = vmor %vm458_vm11, %vm558_vm12  ;;  %vm560_vm11 = vcmp.eq.s32.totalorder %v2278_v11, %v2441_v62  ;;  %vm692_vm1 = vcmp.eq.s32.totalorder %v2278_v11, %v2449_v63  ;;  %v2685_v54 = vadd.s32 7, %v2680_v51 }
  0x2b   :  { %v959_v56 = vpack.c.bf16 %v2097_v55, %v2089_v52  ;;  %vm598_vm4 = vmor %vm466_vm14, %vm566_vm15  ;;  %vm568_vm14 = vcmp.eq.s32.totalorder %v2621_v48, %v2441_v62  ;;  %v2690_v57 = vadd.s32 21, %v2680_v51  ;;  %v416_v58 = vrot.slane %v2680_v51, %v2301_v22 }
  0x2c   :  { %vm722_vm6 = vmor %vm590_vm0, %vm690_vm2  ;;  %vm700_vm0 = vcmp.eq.s32.totalorder %v2621_v48, %v2449_v63  ;;  %v516_v59 = vrot.slane %v2685_v54, %v2321_v27  ;;  %v2697_v60 = vadd.s32 25, %v2680_v51  ;;  %v2715_v63 = vadd.s32 7, %v2706_v61 }
  0x2d   :  { %v1017_v47 = vand.u32 %v2479_v6, %v959_v56  ;;  %vm730_vm8 = vmor %vm598_vm4, %vm698_vm3  ;;  %vm824_vm4 = vcmp.eq.s32.totalorder %v2278_v11, %v2464_v3  ;;  %v648_v62 = vrot.slane %v2690_v57, %v2324_v28  ;;  %v2728_v1 = vrot.slane %v416_v58, %v2318_v26 }
  0x2e   :  { %vm854_vm9 = vmor %vm722_vm6, %vm822_vm5  ;;  %vm832_vm6 = vcmp.eq.s32.totalorder %v2621_v48, %v2464_v3  ;;  %v2731_v2 = vrot.slane %v516_v59, %v2344_v33  ;;  %v780_v3 = vrot.slane %v2697_v60, %v2327_v29  ;;  %v524_v10 = vrot.slane %v2715_v63, %v2321_v27 }
  0x2f   :  { %1100 = vmatpush1.bf16.msra.mxu1 %v1017_v47  ;;  %vm862_vm12 = vmor %vm730_vm8, %vm830_vm7  ;;  %v2746_v5 = vrot.slane %v648_v62, %v2347_v34  ;;  %v412_v20 = vrot.slane %v2680_v51, %v2318_v26  ;;  %v644_v23 = vrot.slane %v2690_v57, %v2347_v34  ;;  %v2896_v47 = vrot.slane %v652_v30, %v2347_v34 }
  0x30   :  { %vm2105_vm15 = vmpackc.low %vm862_vm12, %vm854_vm9  ;;  %vm457_vm9 = vcmp.eq.s32.totalorder %v2278_v11, %v2491_v13  ;;  %vm557_vm12 = vcmp.eq.s32.totalorder %v2278_v11, %v2494_v14 }
  0x31   :  { %2106 = vmatprep.subr.msk.bf16.mxu0 %vm2105_vm15, %v2186_v53  ;;  %vm592_vm2 = vmor %vm460_vm10, %vm560_vm11  ;;  %vm465_vm11 = vcmp.eq.s32.totalorder %v2621_v48, %v2491_v13  ;;  %vm689_vm15 = vcmp.eq.s32.totalorder %v2278_v11, %v2513_v17  ;;  %v2753_v13 = vadd.s32 25, %v2706_v61  ;;  %v2822_v31 = vrot.slane %v412_v20, %v2318_v26 }
  0x32   :  { %vm600_vm3 = vmor %vm468_vm13, %vm568_vm14  ;;  %vm565_vm13 = vcmp.eq.s32.totalorder %v2621_v48, %v2494_v14  ;;  %v2766_v14 = vrot.slane %v780_v3, %v2350_v35  ;;  %v2843_v40 = vrot.slane %v644_v23, %v2347_v34 }
  0x33   :  { %vm724_vm5 = vmor %vm592_vm2, %vm692_vm1  ;;  %vm697_vm2 = vcmp.eq.s32.totalorder %v2621_v48, %v2513_v17  ;;  %v2780_v17 = vrot.slane %v524_v10, %v2344_v33  ;;  %v788_v18 = vrot.slane %v2753_v13, %v2327_v29  ;;  %v784_v46 = vrot.slane %v2753_v13, %v2350_v35 }
  0x34   :  { %vm732_vm7 = vmor %vm600_vm3, %vm700_vm0  ;;  %vm821_vm3 = vcmp.eq.s32.totalorder %v2278_v11, %v2538_v21 }
  0x35   :  { %vm856_vm8 = vmor %vm724_vm5, %vm824_vm4  ;;  %vm829_vm5 = vcmp.eq.s32.totalorder %v2621_v48, %v2538_v21  ;;  %v512_v21 = vrot.slane %v2685_v54, %v2344_v33  ;;  %v2812_v25 = vrot.slane %v788_v18, %v2350_v35  ;;  %v2906_v54 = vrot.slane %v784_v46, %v2350_v35 }
  0x36   :  { %vm864_vm10 = vmor %vm732_vm7, %vm832_vm6 }
  0x37   :  { %vm2111_vm14 = vmpackc.low %vm864_vm10, %vm856_vm8  ;;  %vm459_vm8 = vcmp.eq.s32.totalorder %v2278_v11, %v2567_v38  ;;  %vm467_vm10 = vcmp.eq.s32.totalorder %v2621_v48, %v2567_v38  ;;  %v2828_v37 = vrot.slane %v512_v21, %v2344_v33  ;;  %v776_v38 = vrot.slane %v2697_v60, %v2350_v35 }
  0x38   :  { %2112 = vmatprep.subr.msk.bf16.mxu1 %vm2111_vm14, %v2186_v53  ;;  %vm589_vm1 = vmor %vm457_vm9, %vm557_vm12  ;;  %vm559_vm9 = vcmp.eq.s32.totalorder %v2278_v11, %v2570_v39  ;;  %vm691_vm14 = vcmp.eq.s32.totalorder %v2278_v11, %v2589_v43 }
  0x39   :  { %vm597_vm0 = vmor %vm465_vm11, %vm565_vm13  ;;  %vm567_vm11 = vcmp.eq.s32.totalorder %v2621_v48, %v2570_v39 }
  0x3a   :  { %vm721_vm4 = vmor %vm589_vm1, %vm689_vm15  ;;  %vm699_vm15 = vcmp.eq.s32.totalorder %v2621_v48, %v2589_v43  ;;  %vm3296_vm1 = vcmask 220160   ;;  %v520_v43 = vrot.slane %v2715_v63, %v2344_v33 }
  0x3b   :  { %vm729_vm6 = vmor %vm597_vm0, %vm697_vm2 }
  0x3c   :  { %vm853_vm7 = vmor %vm721_vm4, %vm821_vm3  ;;  %vm823_vm3 = vcmp.eq.s32.totalorder %v2278_v11, %v2606_v45  ;;  %vm831_vm4 = vcmp.eq.s32.totalorder %v2621_v48, %v2606_v45  ;;  %v2859_v45 = vrot.slane %v776_v38, %v2350_v35  ;;  %v2878_v52 = vrot.slane %v520_v43, %v2344_v33 }
  0x3d   :  { %vm861_vm12 = vmor %vm729_vm6, %vm829_vm5 }
  0x3e   :  { %vm2107_vm13 = vmpackc.low %vm861_vm12, %vm853_vm7 }
  0x3f   :  { %2108 = vmatpush1.bf16.msk.msra.mxu0 %vm2107_vm13, %v2186_v53  ;;  %vm591_vm2 = vmor %vm459_vm8, %vm559_vm9  ;;  %vm478_vm8 = vcmp.eq.s32.totalorder %v2309_v24, %v2728_v1  ;;  %vm578_vm9 = vcmp.eq.s32.totalorder %v2309_v24, %v2731_v2 }
  0x40   :  { %vm599_vm0 = vmor %vm467_vm10, %vm567_vm11  ;;  %vm486_vm10 = vcmp.eq.s32.totalorder %v2341_v32, %v2728_v1  ;;  %vm586_vm11 = vcmp.eq.s32.totalorder %v2341_v32, %v2731_v2 }
  0x41   :  { %vm723_vm5 = vmor %vm591_vm2, %vm691_vm14  ;;  %vm710_vm14 = vcmp.eq.s32.totalorder %v2309_v24, %v2746_v5  ;;  %vm718_vm2 = vcmp.eq.s32.totalorder %v2341_v32, %v2746_v5 }
  0x42   :  { %vm731_vm6 = vmor %vm599_vm0, %vm699_vm15  ;;  %2109 = vmatmul.mubr.msk.bf16.vlgmr.msra.gmra.mxu0 %vm3296_vm1, %v2724_v0 }
  0x43   :  { %vm855_vm7 = vmor %vm723_vm5, %vm823_vm3  ;;  %1076 = vmatprep.mubr.bf16.mxu0 %v3297_v8  ;;  %vm842_vm3 = vcmp.eq.s32.totalorder %v2309_v24, %v2766_v14  ;;  %vm850_vm5 = vcmp.eq.s32.totalorder %v2341_v32, %v2766_v14 }
  0x44   :  { %vm863_vm12 = vmor %vm731_vm6, %vm831_vm4 }
  0x45   :  { %vm2113_vm13 = vmpackc.low %vm863_vm12, %vm855_vm7  ;;  %vm480_vm7 = vcmp.eq.s32.totalorder %v2309_v24, %v2777_v16  ;;  %vm488_vm12 = vcmp.eq.s32.totalorder %v2341_v32, %v2777_v16 }
  0x46   :  { %2114 = vmatpush1.bf16.msk.msra.mxu1 %vm2113_vm13, %v2186_v53  ;;  %vm610_vm15 = vmor %vm478_vm8, %vm578_vm9  ;;  %vm580_vm8 = vcmp.eq.s32.totalorder %v2309_v24, %v2780_v17  ;;  %vm712_vm13 = vcmp.eq.s32.totalorder %v2309_v24, %v2797_v12 }
  0x47   :  { %vm618_vm0 = vmor %vm486_vm10, %vm586_vm11  ;;  %vm588_vm10 = vcmp.eq.s32.totalorder %v2341_v32, %v2780_v17 }
  0x48   :  { %vm742_vm4 = vmor %vm610_vm15, %vm710_vm14  ;;  %vm720_vm15 = vcmp.eq.s32.totalorder %v2341_v32, %v2797_v12 }
  0x49   :  { %2115 = vmatmul.mubr.msk.bf16.vlgmr.msra.gmra.mxu1 %vm3296_vm1, %v2724_v0  ;;  %vm750_vm6 = vmor %vm618_vm0, %vm718_vm2  ;;  %vm844_vm0 = vcmp.eq.s32.totalorder %v2309_v24, %v2812_v25 }
  0x4a   :  { %1129 = vmatprep.mubr.bf16.mxu1 %v3297_v8  ;;  %2110 = vmatmul.mubr.msk.bf16.gmra.mxu0 %vm3296_vm1, %v2788_v19  ;;  %vm874_vm9 = vmor %vm742_vm4, %vm842_vm3  ;;  %vm852_vm4 = vcmp.eq.s32.totalorder %v2341_v32, %v2812_v25 }
  0x4b   :  { %vm882_vm11 = vmor %vm750_vm6, %vm850_vm5  ;;  %v2092_v36 = vsel %vm874_vm9, 1.0, %v2185_v9  ;;  %1172 = vmatprep.mubr.bf16.mxu0 %v3297_v8  ;;  %vm477_vm5 = vcmp.eq.s32.totalorder %v2309_v24, %v2822_v31  ;;  %vm485_vm9 = vcmp.eq.s32.totalorder %v2341_v32, %v2822_v31 }
  0x4c   :  { %v2100_v39 = vsel %vm882_vm11, 1.0, %v2185_v9  ;;  %vm612_vm14 = vmor %vm480_vm7, %vm580_vm8  ;;  %vm577_vm7 = vcmp.eq.s32.totalorder %v2309_v24, %v2828_v37  ;;  %vm709_vm11 = vcmp.eq.s32.totalorder %v2309_v24, %v2843_v40 }
  0x4d   :  { %v962_v41 = vpack.c.bf16 %v2100_v39, %v2092_v36  ;;  %vm620_vm2 = vmor %vm488_vm12, %vm588_vm10  ;;  %vm585_vm12 = vcmp.eq.s32.totalorder %v2341_v32, %v2828_v37 }
  0x4e   :  { %vm744_vm3 = vmor %vm612_vm14, %vm712_vm13  ;;  %vm717_vm14 = vcmp.eq.s32.totalorder %v2341_v32, %v2843_v40 }
  0x4f   :  { %v1026_v44 = vand.u32 %v2479_v6, %v962_v41  ;;  %vm752_vm6 = vmor %vm620_vm2, %vm720_vm15  ;;  %vm841_vm2 = vcmp.eq.s32.totalorder %v2309_v24, %v2859_v45 }
  0x50   :  { %vm876_vm8 = vmor %vm744_vm3, %vm844_vm0  ;;  %vm849_vm3 = vcmp.eq.s32.totalorder %v2341_v32, %v2859_v45 }
  0x51   :  { %2116 = vmatmul.mubr.msk.bf16.gmra.mxu1 %vm3296_vm1, %v2788_v19  ;;  %1152 = vmatprep.subr.bf16.mxu0 %v1026_v44  ;;  %vm884_vm10 = vmor %vm752_vm6, %vm852_vm4  ;;  %v2094_v49 = vsel %vm876_vm8, 1.0, %v2185_v9  ;;  %vm579_vm6 = vcmp.eq.s32.totalorder %v2309_v24, %v2878_v52  ;;  %vm487_vm8 = vcmp.eq.s32.totalorder %v2341_v32, %v2875_v50 }
  0x52   :  { %v2102_v55 = vsel %vm884_vm10, 1.0, %v2185_v9  ;;  %vm609_vm13 = vmor %vm477_vm5, %vm577_vm7  ;;  %1225 = vmatprep.mubr.bf16.mxu1 %v3297_v8  ;;  %vm479_vm5 = vcmp.eq.s32.totalorder %v2309_v24, %v2875_v50  ;;  %vm711_vm10 = vcmp.eq.s32.totalorder %v2309_v24, %v2896_v47 }
  0x53   :  { %v964_v56 = vpack.c.bf16 %v2102_v55, %v2094_v49  ;;  %vm617_vm15 = vmor %vm485_vm9, %vm585_vm12  ;;  %vm587_vm9 = vcmp.eq.s32.totalorder %v2341_v32, %v2878_v52 }
  0x54   :  { %vm741_vm0 = vmor %vm609_vm13, %vm709_vm11  ;;  %vm719_vm13 = vcmp.eq.s32.totalorder %v2341_v32, %v2896_v47 }
  0x55   :  { %v1032_v51 = vand.u32 %v2479_v6, %v964_v56  ;;  %vm749_vm4 = vmor %vm617_vm15, %vm717_vm14  ;;  %vm843_vm15 = vcmp.eq.s32.totalorder %v2309_v24, %v2906_v54 }
  0x56   :  { %vm873_vm7 = vmor %vm741_vm0, %vm841_vm2  ;;  %vm851_vm0 = vcmp.eq.s32.totalorder %v2341_v32, %v2906_v54 }
  0x57   :  { %1205 = vmatprep.subr.bf16.mxu1 %v1032_v51  ;;  %vm881_vm12 = vmor %vm749_vm4, %vm849_vm3  ;;  %v2091_v57 = vsel %vm873_vm7, 1.0, %v2185_v9  ;;  %vm462_vm4 = vcmp.eq.s32.totalorder %v2278_v11, %v2728_v1  ;;  %vm470_vm7 = vcmp.eq.s32.totalorder %v2621_v48, %v2728_v1 }
  0x58   :  { %v2099_v58 = vsel %vm881_vm12, 1.0, %v2185_v9  ;;  %vm611_vm11 = vmor %vm479_vm5, %vm579_vm6  ;;  %vm562_vm5 = vcmp.eq.s32.totalorder %v2278_v11, %v2731_v2  ;;  %vm694_vm12 = vcmp.eq.s32.totalorder %v2278_v11, %v2746_v5 }
  0x59   :  { %v961_v59 = vpack.c.bf16 %v2099_v58, %v2091_v57  ;;  %vm619_vm14 = vmor %vm487_vm8, %vm587_vm9  ;;  %vm570_vm8 = vcmp.eq.s32.totalorder %v2621_v48, %v2731_v2 }
  0x5a   :  { %vm743_vm2 = vmor %vm611_vm11, %vm711_vm10  ;;  %vm702_vm11 = vcmp.eq.s32.totalorder %v2621_v48, %v2746_v5 }
  0x5b   :  { %v1023_v60 = vand.u32 %v2479_v6, %v961_v59  ;;  %vm751_vm3 = vmor %vm619_vm14, %vm719_vm13  ;;  %vm826_vm14 = vcmp.eq.s32.totalorder %v2278_v11, %v2766_v14 }
  0x5c   :  { %vm875_vm6 = vmor %vm743_vm2, %vm843_vm15  ;;  %vm834_vm2 = vcmp.eq.s32.totalorder %v2621_v48, %v2766_v14 }
  0x5d   :  { %1153 = vmatpush1.bf16.msra.mxu0 %v1023_v60  ;;  %vm883_vm9 = vmor %vm751_vm3, %vm851_vm0  ;;  %v2093_v24 = vsel %vm875_vm6, 1.0, %v2185_v9  ;;  %vm464_vm6 = vcmp.eq.s32.totalorder %v2278_v11, %v2777_v16 }
  0x5e   :  { %v2101_v32 = vsel %vm883_vm9, 1.0, %v2185_v9  ;;  %vm594_vm10 = vmor %vm462_vm4, %vm562_vm5  ;;  %vm564_vm4 = vcmp.eq.s32.totalorder %v2278_v11, %v2780_v17 }
  0x5f   :  { %v963_v61 = vpack.c.bf16 %v2101_v32, %v2093_v24  ;;  %vm602_vm13 = vmor %vm470_vm7, %vm570_vm8  ;;  %vm472_vm7 = vcmp.eq.s32.totalorder %v2621_v48, %v2777_v16  ;;  %vm572_vm8 = vcmp.eq.s32.totalorder %v2621_v48, %v2780_v17 }
  0x60   :  { %vm726_vm15 = vmor %vm594_vm10, %vm694_vm12  ;;  %vm696_vm12 = vcmp.eq.s32.totalorder %v2278_v11, %v2797_v12 }
  0x61   :  { %v1029_v62 = vand.u32 %v2479_v6, %v963_v61  ;;  %vm734_vm0 = vmor %vm602_vm13, %vm702_vm11  ;;  %vm704_vm11 = vcmp.eq.s32.totalorder %v2621_v48, %v2797_v12 }
  0x62   :  { %vm858_vm3 = vmor %vm726_vm15, %vm826_vm14  ;;  %vm828_vm14 = vcmp.eq.s32.totalorder %v2278_v11, %v2812_v25 }
  0x63   :  { %1206 = vmatpush1.bf16.msra.mxu1 %v1029_v62  ;;  %vm866_vm5 = vmor %vm734_vm0, %vm834_vm2  ;;  %vm836_vm2 = vcmp.eq.s32.totalorder %v2621_v48, %v2812_v25 }
  0x64   :  { %vm2117_vm9 = vmpackc.low %vm866_vm5, %vm858_vm3  ;;  %vm461_vm3 = vcmp.eq.s32.totalorder %v2278_v11, %v2822_v31  ;;  %vm561_vm5 = vcmp.eq.s32.totalorder %v2278_v11, %v2828_v37 }
  0x65   :  { %2118 = vmatprep.subr.msk.bf16.mxu0 %vm2117_vm9, %v2186_v53  ;;  %vm596_vm10 = vmor %vm464_vm6, %vm564_vm4  ;;  %vm469_vm4 = vcmp.eq.s32.totalorder %v2621_v48, %v2822_v31  ;;  %vm693_vm9 = vcmp.eq.s32.totalorder %v2278_v11, %v2843_v40 }
  0x66   :  { %vm604_vm13 = vmor %vm472_vm7, %vm572_vm8  ;;  %vm569_vm7 = vcmp.eq.s32.totalorder %v2621_v48, %v2828_v37 }
  0x67   :  { %vm728_vm15 = vmor %vm596_vm10, %vm696_vm12  ;;  %vm701_vm10 = vcmp.eq.s32.totalorder %v2621_v48, %v2843_v40 }
  0x68   :  { %vm736_vm0 = vmor %vm604_vm13, %vm704_vm11  ;;  %vm825_vm13 = vcmp.eq.s32.totalorder %v2278_v11, %v2859_v45 }
  0x69   :  { %vm860_vm1 = vmor %vm728_vm15, %vm828_vm14  ;;  %vm833_vm15 = vcmp.eq.s32.totalorder %v2621_v48, %v2859_v45 }
  0x6a   :  { %vm868_vm6 = vmor %vm736_vm0, %vm836_vm2 }
  0x6b   :  { %vm2123_vm8 = vmpackc.low %vm868_vm6, %vm860_vm1  ;;  %vm463_vm1 = vcmp.eq.s32.totalorder %v2278_v11, %v2875_v50  ;;  %vm563_vm6 = vcmp.eq.s32.totalorder %v2278_v11, %v2878_v52 }
  0x6c   :  { %2124 = vmatprep.subr.msk.bf16.mxu1 %vm2123_vm8, %v2186_v53  ;;  %vm593_vm12 = vmor %vm461_vm3, %vm561_vm5  ;;  %vm471_vm5 = vcmp.eq.s32.totalorder %v2621_v48, %v2875_v50  ;;  %vm695_vm8 = vcmp.eq.s32.totalorder %v2278_v11, %v2896_v47 }
  0x6d   :  { %vm601_vm11 = vmor %vm469_vm4, %vm569_vm7  ;;  %vm571_vm4 = vcmp.eq.s32.totalorder %v2621_v48, %v2878_v52 }
  0x6e   :  { %vm725_vm14 = vmor %vm593_vm12, %vm693_vm9  ;;  %vm703_vm12 = vcmp.eq.s32.totalorder %v2621_v48, %v2896_v47 }
  0x6f   :  { %vm733_vm2 = vmor %vm601_vm11, %vm701_vm10  ;;  %vm827_vm11 = vcmp.eq.s32.totalorder %v2278_v11, %v2906_v54 }
  0x70   :  { %vm857_vm0 = vmor %vm725_vm14, %vm825_vm13  ;;  %vm835_vm14 = vcmp.eq.s32.totalorder %v2621_v48, %v2906_v54 }
  0x71   :  { %vm865_vm3 = vmor %vm733_vm2, %vm833_vm15  ;;  %vm3313_vm2 = vcmask 220160  }
  0x72   :  { %vm2119_vm7 = vmpackc.low %vm865_vm3, %vm857_vm0 }
  0x73   :  { %2120 = vmatpush1.bf16.msk.msra.mxu0 %vm2119_vm7, %v2186_v53  ;;  %vm595_vm9 = vmor %vm463_vm1, %vm563_vm6  ;;  %vm1256_vm7 = vcmask 261120  }
  0x74   :  { %vm603_vm10 = vmor %vm471_vm5, %vm571_vm4 }
  0x75   :  { %vm727_vm13 = vmor %vm595_vm9, %vm695_vm8  ;;  %vm2008_vm8 = vcmask 1040384  }
  0x76   :  { %vm735_vm15 = vmor %vm603_vm10, %vm703_vm12  ;;  %2121 = vmatmul.mubr.msk.bf16.vlgmr.msra.gmra.mxu0 %vm3313_vm2, %v2724_v0 }
  0x77   :  { %vm859_vm0 = vmor %vm727_vm13, %vm827_vm11  ;;  %1182 = vmatprep.mubr.bf16.mxu0 %v3297_v8 }
  0x78   :  { %vm867_vm3 = vmor %vm735_vm15, %vm835_vm14 }
  0x79   :  { %vm2125_vm1 = vmpackc.low %vm867_vm3, %vm859_vm0 }
  0x7a   :  { %2126 = vmatpush1.bf16.msk.msra.mxu1 %vm2125_vm1, %v2186_v53  ;;  %vm3314_vm6 = vmmov %vm3313_vm2 }
  0x7b   :  { %vm3315_vm5 = vmmov %vm3313_vm2 }
  0x7c   :  { %vm3316_vm4 = vmmov %vm3313_vm2 }
  0x7d   :  { %2127 = vmatmul.mubr.msk.bf16.vlgmr.msra.gmra.mxu1 %vm3314_vm6, %v2724_v0 }
  0x7e   :  { %1235 = vmatprep.mubr.bf16.mxu1 %v3297_v8  ;;  %2122 = vmatmul.mubr.msk.bf16.gmra.mxu0 %vm3315_vm5, %v2788_v19 }
  0x7f   :  { %1295 = vmatprep.mubr.bf16.mxu0 %v3297_v8 }
  0x81   :  { %v3006_v1 = vpop.permute.xlu0 %75 }
  0x85   :  { %2128 = vmatmul.mubr.msk.bf16.gmra.mxu1 %vm3316_vm4, %v2788_v19  ;;  %v3008_v2 = vpop.permute.xlu1 %65  ;;  %v3010_v13 = vpop.permute.xlu0 %80 }
  0x86   :  { %1348 = vmatprep.mubr.bf16.mxu1 %v3297_v8 }
  0x8b   :  { %v3013_v16 = vpop.permute.xlu1 %70 }
  0xcb   :  { %v174_v6 = vpop.f32.mrf.mxu0  ;;  %v227_v9 = vpop.f32.mrf.mxu1 }
  0xcc   :  { %v175_v15 = vadd.f32 %v174_v6, %v3008_v2  ;;  %v228_v18 = vadd.f32 %v227_v9, %v3008_v2 }
  0xcd   :  { %v176_v48 = vpop.f32.mrf.mxu0  ;;  %v229_v63 = vpop.f32.mrf.mxu1 }
  0xce   :  { %v177_v38 = vadd.f32 %v176_v48, %v3008_v2  ;;  %v230_v39 = vadd.f32 %v229_v63, %v3008_v2  ;;  %v354_v63 = vmax.f32 %v228_v18, 0.0  ;;  %v3035_v18 = vld [vmem:[%s3287_s5] sm:$0xff]  }
  0xcf   :  { %v178_v53 = vpop.f32.mrf.mxu0  ;;  %v231_v0 = vpop.f32.mrf.mxu1 }
  0xd0   :  { %v179_v43 = vadd.f32 %v178_v53, %v3013_v16  ;;  %v232_v44 = vadd.f32 %v231_v0, %v3013_v16  ;;  %v353_v59 = vmax.f32 %v177_v38, 0.0  ;;  %v355_v61 = vmax.f32 %v230_v39, 0.0 }
  0xd1   :  { %v180_v3 = vpop.f32.mrf.mxu0  ;;  %v233_v4 = vpop.f32.mrf.mxu1 }
  0xd2   :  { %v181_v19 = vadd.f32 %v180_v3, %v3013_v16  ;;  %v234_v23 = vadd.f32 %v233_v4, %v3013_v16  ;;  %v360_v62 = vmax.f32 %v179_v43, 0.0  ;;  %v362_v53 = vmax.f32 %v232_v44, 0.0 }
  0xd3   :  { %v184_v5 = vpop.f32.mrf.mxu0  ;;  %v237_v7 = vpop.f32.mrf.mxu1 }
  0xd4   :  { %v185_v25 = vadd.f32 %v184_v5, %v3006_v1  ;;  %v238_v40 = vadd.f32 %v237_v7, %v3006_v1  ;;  %v361_v49 = vmax.f32 %v181_v19, 0.0  ;;  %v363_v47 = vmax.f32 %v234_v23, 0.0 }
  0xd5   :  { %v186_v10 = vpop.f32.mrf.mxu0  ;;  %v239_v14 = vpop.f32.mrf.mxu1  ;;  %v352_v5 = vmax.f32 %v175_v15, 0.0 }
  0xd6   :  { %v187_v20 = vadd.f32 %v186_v10, %v3006_v1  ;;  %v240_v31 = vadd.f32 %v239_v14, %v3006_v1  ;;  %v368_v51 = vmax.f32 %v185_v25, 0.0  ;;  %v370_v60 = vmax.f32 %v238_v40, 0.0 }
  0xd7   :  { %v188_v17 = vpop.f32.mrf.mxu0  ;;  %v241_v21 = vpop.f32.mrf.mxu1  ;;  %v970_v0 = vpack.c.bf16 %v361_v49, %v353_v59  ;;  %v972_v7 = vpack.c.bf16 %v363_v47, %v355_v61 }
  0xd8   :  { %v189_v12 = vadd.f32 %v188_v17, %v3010_v13  ;;  %v242_v36 = vadd.f32 %v241_v21, %v3010_v13  ;;  %v369_v50 = vmax.f32 %v187_v20, 0.0  ;;  %v371_v54 = vmax.f32 %v240_v31, 0.0 }
  0xd9   :  { %v190_v37 = vpop.f32.mrf.mxu0  ;;  %v243_v42 = vpop.f32.mrf.mxu1  ;;  %v969_v17 = vpack.c.bf16 %v360_v62, %v352_v5  ;;  %v971_v20 = vpack.c.bf16 %v362_v53, %v354_v63 }
  0xda   :  { %v191_v41 = vadd.f32 %v190_v37, %v3010_v13  ;;  %v376_v45 = vmax.f32 %v189_v12, 0.0  ;;  %v244_v30 = vadd.f32 %v243_v42, %v3010_v13  ;;  %v378_v52 = vmax.f32 %v242_v36, 0.0 }
  0xdb   :  { %v280_v46 = vpop.f32.mrf.mxu0  ;;  %v3030_v56 = vpop.f32.mrf.mxu1 }
  0xdc   :  { %v377_v55 = vmax.f32 %v191_v41, 0.0  ;;  %v379_v57 = vmax.f32 %v244_v30, 0.0  ;;  %v977_v6 = vpack.c.bf16 %v376_v45, %v368_v51  ;;  %v979_v3 = vpack.c.bf16 %v378_v52, %v370_v60 }
  0xdd   :  { %v282_v58 = vpop.f32.mrf.mxu0  ;;  %v335_v32 = vpop.f32.mrf.mxu1  ;;  %v281_v25 = vadd.f32 %v280_v46, %v3008_v2 }
  0xde   :  { %v978_v24 = vpack.c.bf16 %v377_v55, %v369_v50  ;;  %v980_v9 = vpack.c.bf16 %v379_v57, %v371_v54  ;;  %v283_v43 = vadd.f32 %v282_v58, %v3008_v2  ;;  %v336_v49 = vadd.f32 %v335_v32, %v3008_v2 }
  0xdf   :  { %v284_v48 = vpop.f32.mrf.mxu0  ;;  %v337_v4 = vpop.f32.mrf.mxu1  ;;  %v334_v32 = vadd.f32 %v3030_v56, %v3008_v2  ;;  %v356_v5 = vmax.f32 %v281_v25, 0.0 }
  0xe0   :  { %1275 = vmatprep.subr.bf16.mxu0 %v978_v24  ;;  %1328 = vmatprep.subr.bf16.mxu1 %v980_v9  ;;  %v285_v50 = vadd.f32 %v284_v48, %v3013_v16  ;;  %v338_v52 = vadd.f32 %v337_v4, %v3013_v16 }
  0xe1   :  { %v286_v10 = vpop.f32.mrf.mxu0  ;;  %1276 = vmatpush1.bf16.msra.mxu0 %v977_v6  ;;  %v339_v14 = vpop.f32.mrf.mxu1  ;;  %1329 = vmatpush1.bf16.msra.mxu1 %v979_v3  ;;  %v357_v6 = vmax.f32 %v283_v43, 0.0  ;;  %v358_v2 = vmax.f32 %v334_v32, 0.0 }
  0xe2   :  { %1277 = vmatprep.subr.bf16.mxu0 %v970_v0  ;;  %1330 = vmatprep.subr.bf16.mxu1 %v972_v7  ;;  %v287_v31 = vadd.f32 %v286_v10, %v3013_v16  ;;  %v340_v39 = vadd.f32 %v339_v14, %v3013_v16  ;;  %v364_v48 = vmax.f32 %v285_v50, 0.0  ;;  %v366_v63 = vmax.f32 %v338_v52, 0.0  ;;  %v3109_v32 = vpop.permute.xlu0 %1491 }
  0xe3   :  { %v290_v19 = vpop.f32.mrf.mxu0  ;;  %v343_v12 = vpop.f32.mrf.mxu1 }
  0xe4   :  { %v291_v44 = vadd.f32 %v290_v19, %v3006_v1  ;;  %v344_v45 = vadd.f32 %v343_v12, %v3006_v1  ;;  %v365_v58 = vmax.f32 %v287_v31, 0.0  ;;  %v367_v59 = vmax.f32 %v340_v39, 0.0 }
  0xe5   :  { %v292_v21 = vpop.f32.mrf.mxu0  ;;  %1278 = vmatpush1.bf16.msra.mxu0 %v969_v17  ;;  %v345_v15 = vpop.f32.mrf.mxu1  ;;  %1331 = vmatpush1.bf16.msra.mxu1 %v971_v20  ;;  %v973_v56 = vpack.c.bf16 %v364_v48, %v356_v5  ;;  %v975_v7 = vpack.c.bf16 %v366_v63, %v358_v2 }
  0xe6   :  { %v293_v36 = vadd.f32 %v292_v21, %v3006_v1  ;;  %v346_v40 = vadd.f32 %v345_v15, %v3006_v1  ;;  %v2159_v1 = vld [vmem:[%s3287_s5 + $0x8] sm:$0xff]   ;;  %v372_v61 = vmax.f32 %v291_v44, 0.0  ;;  %v374_v62 = vmax.f32 %v344_v45, 0.0 }
  0xe7   :  { %v294_v23 = vpop.f32.mrf.mxu0  ;;  %v347_v38 = vpop.f32.mrf.mxu1  ;;  %v974_v3 = vpack.c.bf16 %v365_v58, %v357_v6 }
  0xe8   :  { %v295_v37 = vadd.f32 %v294_v23, %v3010_v13  ;;  %2131 = vmatmul.mubr.msk.bf16.vlgmr.msra.gmra.mxu0 %vm1256_vm7, %v3035_v18  ;;  %v348_v41 = vadd.f32 %v347_v38, %v3010_v13  ;;  %2133 = vmatmul.mubr.msk.bf16.vlgmr.msra.gmra.mxu1 %vm1256_vm7, %v3035_v18  ;;  %v373_v47 = vmax.f32 %v293_v36, 0.0  ;;  %v375_v60 = vmax.f32 %v346_v40, 0.0  ;;  %v3111_v6 = vpop.permute.xlu1 %1496 }
  0xe9   :  { %v296_v42 = vpop.f32.mrf.mxu0  ;;  %1305 = vmatprep.mubr.bf16.mxu0 %v3297_v8  ;;  %v349_v46 = vpop.f32.mrf.mxu1  ;;  %1358 = vmatprep.mubr.bf16.mxu1 %v3297_v8 }
  0xea   :  { %v297_v30 = vadd.f32 %v296_v42, %v3010_v13  ;;  %v350_v55 = vadd.f32 %v349_v46, %v3010_v13  ;;  %v380_v51 = vmax.f32 %v295_v37, 0.0  ;;  %v382_v54 = vmax.f32 %v348_v41, 0.0 }
  0xeb   :  { %v359_v13 = vmax.f32 %v336_v49, 0.0 }
  0xec   :  { %v381_v57 = vmax.f32 %v297_v30, 0.0  ;;  %v383_v24 = vmax.f32 %v350_v55, 0.0  ;;  %v981_v53 = vpack.c.bf16 %v380_v51, %v372_v61  ;;  %v983_v0 = vpack.c.bf16 %v382_v54, %v374_v62 }
  0xed   :  { %v976_v4 = vpack.c.bf16 %v367_v59, %v359_v13 }
  0xee   :  { %v982_v16 = vpack.c.bf16 %v381_v57, %v373_v47  ;;  %v984_v9 = vpack.c.bf16 %v383_v24, %v375_v60 }
  0xf0   :  { %2132 = vmatmul.mubr.msk.bf16.gmra.mxu0 %vm1256_vm7, %v2159_v1  ;;  %1381 = vmatprep.subr.bf16.mxu0 %v982_v16 }
  0xf1   :  { %2134 = vmatmul.mubr.msk.bf16.gmra.mxu1 %vm1256_vm7, %v2159_v1  ;;  %1434 = vmatprep.subr.bf16.mxu1 %v984_v9 }
  0xf2   :  { %1382 = vmatpush1.bf16.msra.mxu0 %v981_v53  ;;  %1435 = vmatpush1.bf16.msra.mxu1 %v983_v0  ;;  %v3113_v53 = vpop.permute.xlu0 %1481 }
  0xf3   :  { %1383 = vmatprep.subr.bf16.mxu0 %v974_v3  ;;  %1436 = vmatprep.subr.bf16.mxu1 %v976_v4 }
  0xf4   :  { %1401 = vmatprep.mubr.bf16.mxu0 %v3297_v8  ;;  %1454 = vmatprep.mubr.bf16.mxu1 %v3297_v8 }
  0xf6   :  { %1384 = vmatpush1.bf16.msra.mxu0 %v973_v56  ;;  %1437 = vmatpush1.bf16.msra.mxu1 %v975_v7 }
  0xf9   :  { %2135 = vmatmul.mubr.msk.bf16.vlgmr.msra.gmra.mxu0 %vm1256_vm7, %v3035_v18  ;;  %2137 = vmatmul.mubr.msk.bf16.vlgmr.msra.gmra.mxu1 %vm1256_vm7, %v3035_v18 }
  0xfa   :  { %1411 = vmatprep.mubr.bf16.mxu0 %v3297_v8  ;;  %1464 = vmatprep.mubr.bf16.mxu1 %v3297_v8 }
 0x101   :  { %2136 = vmatmul.mubr.msk.bf16.gmra.mxu0 %vm1256_vm7, %v2159_v1  ;;  %2138 = vmatmul.mubr.msk.bf16.gmra.mxu1 %vm1256_vm7, %v2159_v1 }
 0x102   :  { %1633 = vmatprep.mubr.bf16.mxu0 %v3297_v8  ;;  %1676 = vmatprep.mubr.bf16.mxu1 %v3297_v8  ;;  %v1068_v10 = vpop.f32.mrf.mxu0 }
 0x104   :  { %v1070_v17 = vpop.f32.mrf.mxu0 }
 0x106   :  { %v1072_v20 = vpop.f32.mrf.mxu0 }
 0x108   :  { %v1074_v21 = vpop.f32.mrf.mxu0 }
 0x109   :  { %v1121_v14 = vpop.f32.mrf.mxu1 }
 0x10a   :  { %v1078_v15 = vpop.f32.mrf.mxu0 }
 0x10b   :  { %v1123_v19 = vpop.f32.mrf.mxu1 }
 0x10c   :  { %v1080_v25 = vpop.f32.mrf.mxu0 }
 0x10d   :  { %v1125_v12 = vpop.f32.mrf.mxu1 }
 0x10e   :  { %v1082_v36 = vpop.f32.mrf.mxu0 }
 0x10f   :  { %v1127_v18 = vpop.f32.mrf.mxu1 }
 0x110   :  { %v1084_v38 = vpop.f32.mrf.mxu0 }
 0x111   :  { %v1131_v23 = vpop.f32.mrf.mxu1 }
 0x113   :  { %v1133_v31 = vpop.f32.mrf.mxu1 }
 0x115   :  { %v1135_v37 = vpop.f32.mrf.mxu1 }
 0x117   :  { %v1137_v39 = vpop.f32.mrf.mxu1 }
 0x136   :  { %v3077_v40 = vpop.f32.mrf.mxu0 }
 0x138   :  { %v3081_v42 = vpop.f32.mrf.mxu0 }
 0x13a   :  { %v3085_v44 = vpop.f32.mrf.mxu0 }
 0x13c   :  { %v3089_v30 = vpop.f32.mrf.mxu0 }
 0x13d   :  { %v3079_v41 = vpop.f32.mrf.mxu1 }
 0x13e   :  { %v3093_v49 = vpop.f32.mrf.mxu0 }
 0x13f   :  { %v3083_v43 = vpop.f32.mrf.mxu1 }
 0x140   :  { %v3097_v52 = vpop.f32.mrf.mxu0 }
 0x141   :  { %v3087_v45 = vpop.f32.mrf.mxu1 }
 0x142   :  { %v3101_v47 = vpop.f32.mrf.mxu0 }
 0x143   :  { %v3091_v46 = vpop.f32.mrf.mxu1 }
 0x144   :  { %v3105_v54 = vpop.f32.mrf.mxu0 }
 0x145   :  { %v3095_v50 = vpop.f32.mrf.mxu1 }
 0x147   :  { %v3099_v55 = vpop.f32.mrf.mxu1 }
 0x149   :  { %v3103_v51 = vpop.f32.mrf.mxu1 }
 0x14b   :  { %v3107_v57 = vpop.f32.mrf.mxu1 }
 0x1a8   :  { %v1297_v1 = vpop.f32.mrf.mxu0  ;;  %v1350_v58 = vpop.f32.mrf.mxu1 }
 0x1a9   :  { %v1298_v13 = vadd.f32 %v1297_v1, %v1068_v10  ;;  %v1351_v2 = vadd.f32 %v1350_v58, %v1121_v14  ;;  %v3118_v1 = vpop.permute.xlu1 %1486 }
 0x1aa   :  { %v1299_v59 = vpop.f32.mrf.mxu0  ;;  %v1352_v60 = vpop.f32.mrf.mxu1 }
 0x1ab   :  { %v3116_v5 = vadd.f32 %v3113_v53, %v1298_v13  ;;  %v1300_v56 = vadd.f32 %v1299_v59, %v1070_v17  ;;  %v1353_v29 = vadd.f32 %v1352_v60, %v1123_v19 }
 0x1ac   :  { %v1301_v24 = vpop.f32.mrf.mxu0  ;;  %v1354_v61 = vpop.f32.mrf.mxu1 }
 0x1ad   :  { %v1302_v22 = vadd.f32 %v1301_v24, %v1072_v20  ;;  %v1355_v35 = vadd.f32 %v1354_v61, %v1125_v12  ;;  %v1500_v19 = vadd.f32 %v3113_v53, %v1300_v56  ;;  %v1502_v20 = vadd.f32 %v3113_v53, %v1353_v29 }
 0x1ae   :  { %v1303_v62 = vpop.f32.mrf.mxu0  ;;  %v1356_v16 = vpop.f32.mrf.mxu1 }
 0x1af   :  { %v1304_v0 = vadd.f32 %v1303_v62, %v1074_v21  ;;  %v1357_v27 = vadd.f32 %v1356_v16, %v1127_v18  ;;  %v1509_v24 = vadd.f32 %v3118_v1, %v1355_v35  ;;  %v1534_v35 = vmax.f32 %v1502_v20, 0.0 }
 0x1b0   :  { %v1307_v9 = vpop.f32.mrf.mxu0 }
 0x1b1   :  { %v1360_v48 = vpop.f32.mrf.mxu1  ;;  %v1308_v7 = vadd.f32 %v1307_v9, %v1078_v15  ;;  %v1508_v62 = vadd.f32 %v3118_v1, %v1304_v0  ;;  %v1510_v12 = vadd.f32 %v3118_v1, %v1357_v27  ;;  %v1532_v0 = vmax.f32 %v1500_v19, 0.0 }
 0x1b2   :  { %v1309_v63 = vpop.f32.mrf.mxu0  ;;  %v1361_v34 = vadd.f32 %v1360_v48, %v1131_v23 }
 0x1b3   :  { %v1310_v3 = vadd.f32 %v1309_v63, %v1080_v25  ;;  %v1362_v4 = vpop.f32.mrf.mxu1 }
 0x1b4   :  { %v1311_v8 = vpop.f32.mrf.mxu0  ;;  %v1363_v28 = vadd.f32 %v1362_v4, %v1133_v31 }
 0x1b5   :  { %v1312_v11 = vadd.f32 %v1311_v8, %v1082_v36  ;;  %v1364_v10 = vpop.f32.mrf.mxu1  ;;  %v1516_v13 = vadd.f32 %v3109_v32, %v1310_v3  ;;  %v1515_v8 = vadd.f32 %v3109_v32, %v1308_v7  ;;  %v1542_v3 = vmax.f32 %v1510_v12, 0.0 }
 0x1b6   :  { %v1365_v21 = vadd.f32 %v1364_v10, %v1135_v37  ;;  %v1313_v25 = vpop.f32.mrf.mxu0  ;;  %v1518_v23 = vadd.f32 %v3109_v32, %v1363_v28  ;;  %v1501_v28 = vadd.f32 %v3113_v53, %v1351_v2  ;;  %v1531_v2 = vmax.f32 %v3116_v5, 0.0  ;;  %v3141_v5 = vld [vmem:[%s3290_s8] sm:$0xff]  }
 0x1b7   :  { %v1523_v14 = vadd.f32 %v3111_v6, %v1312_v11  ;;  %v1314_v17 = vadd.f32 %v1313_v25, %v1084_v38  ;;  %v1366_v15 = vpop.f32.mrf.mxu1  ;;  %v1507_v11 = vadd.f32 %v3118_v1, %v1302_v22  ;;  %v1517_v38 = vadd.f32 %v3109_v32, %v1361_v34 }
 0x1b8   :  { %v1525_v18 = vadd.f32 %v3111_v6, %v1365_v21  ;;  %v1367_v31 = vadd.f32 %v1366_v15, %v1137_v39  ;;  %v1540_v39 = vmax.f32 %v1508_v62, 0.0  ;;  %v1548_v61 = vmax.f32 %v1516_v13, 0.0 }
 0x1b9   :  { %v1524_v36 = vadd.f32 %v3111_v6, %v1314_v17  ;;  %v1403_v37 = vpop.f32.mrf.mxu0  ;;  %v1456_v58 = vpop.f32.mrf.mxu1  ;;  %v1555_v59 = vmax.f32 %v1523_v14, 0.0  ;;  %v1547_v9 = vmax.f32 %v1515_v8, 0.0  ;;  %v1550_v22 = vmax.f32 %v1518_v23, 0.0 }
 0x1ba   :  { %v1526_v60 = vadd.f32 %v3111_v6, %v1367_v31  ;;  %v1557_v48 = vmax.f32 %v1525_v18, 0.0  ;;  %v1539_v7 = vmax.f32 %v1507_v11, 0.0  ;;  %v1549_v10 = vmax.f32 %v1517_v38, 0.0 }
 0x1bb   :  { %v1556_v29 = vmax.f32 %v1524_v36, 0.0  ;;  %v1405_v16 = vpop.f32.mrf.mxu0  ;;  %v1458_v27 = vpop.f32.mrf.mxu1  ;;  %v1573_v21 = vpack.c.bf16 %v1555_v59, %v1547_v9  ;;  %v1541_v25 = vmax.f32 %v1509_v24, 0.0  ;;  %v1566_v17 = vpack.c.bf16 %v1540_v39, %v1532_v0 }
 0x1bc   :  { %v1558_v63 = vmax.f32 %v1526_v60, 0.0  ;;  %v1575_v15 = vpack.c.bf16 %v1557_v48, %v1549_v10  ;;  %v1533_v19 = vmax.f32 %v1501_v28, 0.0  ;;  %v1568_v31 = vpack.c.bf16 %v1542_v3, %v1534_v35 }
 0x1bd   :  { %v1407_v4 = vpop.f32.mrf.mxu0  ;;  %v1460_v34 = vpop.f32.mrf.mxu1  ;;  %v1574_v56 = vpack.c.bf16 %v1556_v29, %v1548_v61  ;;  %v1565_v12 = vpack.c.bf16 %v1539_v7, %v1531_v2  ;;  %v1404_v59 = vadd.f32 %v1403_v37, %v3077_v40  ;;  %v1457_v60 = vadd.f32 %v1456_v58, %v3079_v41 }
 0x1be   :  { %v1576_v14 = vpack.c.bf16 %v1558_v63, %v1550_v22  ;;  %v1567_v23 = vpack.c.bf16 %v1541_v25, %v1533_v19  ;;  %v1406_v24 = vadd.f32 %v1405_v16, %v3081_v42  ;;  %v1459_v39 = vadd.f32 %v1458_v27, %v3083_v43 }
 0x1bf   :  { %v1409_v62 = vpop.f32.mrf.mxu0  ;;  %v1462_v13 = vpop.f32.mrf.mxu1  ;;  %1613 = vmatprep.subr.bf16.mxu0 %v1574_v56  ;;  %v1408_v48 = vadd.f32 %v1407_v4, %v3085_v44  ;;  %v1461_v40 = vadd.f32 %v1460_v34, %v3087_v45  ;;  %v3317_v58 = vmov 0   ;;  %v1503_v25 = vadd.f32 %v3113_v53, %v1404_v59 }
 0x1c0   :  { %1614 = vmatpush1.bf16.msra.mxu0 %v1573_v21  ;;  %1656 = vmatprep.subr.bf16.mxu1 %v1576_v14  ;;  %v1410_v20 = vadd.f32 %v1409_v62, %v3089_v30  ;;  %v1463_v36 = vadd.f32 %v1462_v13, %v3091_v46  ;;  %v1504_v16 = vadd.f32 %v3113_v53, %v1406_v24 }
 0x1c1   :  { %v1413_v8 = vpop.f32.mrf.mxu0  ;;  %v1466_v18 = vpop.f32.mrf.mxu1  ;;  %1615 = vmatprep.subr.bf16.mxu0 %v1566_v17  ;;  %1657 = vmatpush1.bf16.msra.mxu1 %v1575_v15  ;;  %v1506_v27 = vadd.f32 %v3113_v53, %v1459_v39  ;;  %v1511_v3 = vadd.f32 %v3118_v1, %v1408_v48  ;;  %v1513_v22 = vadd.f32 %v3118_v1, %v1461_v40 }
 0x1c2   :  { %1658 = vmatprep.subr.bf16.mxu1 %v1568_v31  ;;  %v1414_v30 = vadd.f32 %v1413_v8, %v3093_v49  ;;  %v1467_v46 = vadd.f32 %v1466_v18, %v3095_v50  ;;  %v1512_v43 = vadd.f32 %v3118_v1, %v1410_v20  ;;  %v1514_v49 = vadd.f32 %v3118_v1, %v1463_v36  ;;  %v3186_v39 = vpop.permute.xlu1 %1590 }
 0x1c3   :  { %v1415_v11 = vpop.f32.mrf.mxu0  ;;  %v1468_v38 = vpop.f32.mrf.mxu1  ;;  %v1505_v62 = vadd.f32 %v3113_v53, %v1457_v60  ;;  %v1536_v14 = vmax.f32 %v1504_v16, 0.0  ;;  %v1538_v17 = vmax.f32 %v1506_v27, 0.0  ;;  %v1543_v15 = vmax.f32 %v1511_v3, 0.0 }
 0x1c4   :  { %1616 = vmatpush1.bf16.msra.mxu0 %v1565_v12  ;;  %v1416_v61 = vadd.f32 %v1415_v11, %v3097_v52  ;;  %v1469_v29 = vadd.f32 %v1468_v38, %v3099_v55  ;;  %v1519_v63 = vadd.f32 %v3109_v32, %v1414_v30  ;;  %v1521_v0 = vadd.f32 %v3109_v32, %v1467_v46  ;;  %v3183_v38 = vpop.permute.xlu0 %1585 }
 0x1c5   :  { %v1417_v28 = vpop.f32.mrf.mxu0  ;;  %v1470_v9 = vpop.f32.mrf.mxu1  ;;  %1659 = vmatpush1.bf16.msra.mxu1 %v1567_v23  ;;  %v1544_v4 = vmax.f32 %v1512_v43, 0.0  ;;  %v1546_v34 = vmax.f32 %v1514_v49, 0.0  ;;  %v1545_v19 = vmax.f32 %v1513_v22, 0.0  ;;  %v1535_v23 = vmax.f32 %v1503_v25, 0.0 }
 0x1c6   :  { %v1418_v41 = vadd.f32 %v1417_v28, %v3101_v47  ;;  %v1471_v42 = vadd.f32 %v1470_v9, %v3103_v51  ;;  %v1520_v50 = vadd.f32 %v3109_v32, %v1416_v61  ;;  %v1522_v52 = vadd.f32 %v3109_v32, %v1469_v29 }
 0x1c7   :  { %v1419_v55 = vpop.f32.mrf.mxu0  ;;  %v1472_v37 = vpop.f32.mrf.mxu1  ;;  %2140 = vmatmul.mubr.msk.bf16.vlgmr.msra.gmra.mxu0 %vm1256_vm7, %v3141_v5  ;;  %v1551_v13 = vmax.f32 %v1519_v63, 0.0  ;;  %v1553_v1 = vmax.f32 %v1521_v0, 0.0  ;;  %v1570_v31 = vpack.c.bf16 %v1544_v4, %v1536_v14  ;;  %v1572_v12 = vpack.c.bf16 %v1546_v34, %v1538_v17 }
 0x1c8   :  { %v1527_v44 = vadd.f32 %v3111_v6, %v1418_v41  ;;  %v1529_v45 = vadd.f32 %v3111_v6, %v1471_v42  ;;  %v1420_v47 = vadd.f32 %v1419_v55, %v3105_v54  ;;  %v1473_v51 = vadd.f32 %v1472_v37, %v3107_v57  ;;  %1719 = vmatprep.mubr.bf16.mxu0 %v3317_v58  ;;  %v3194_v55 = vpop.permute.xlu0 %1793  ;;  %v3196_v37 = vpop.permute.xlu1 %1798 }
 0x1c9   :  { %2141 = vmatmul.mubr.msk.bf16.vlgmr.msra.gmra.mxu1 %vm1256_vm7, %v3141_v5  ;;  %v1552_v10 = vmax.f32 %v1520_v50, 0.0  ;;  %v1554_v21 = vmax.f32 %v1522_v52, 0.0  ;;  %v1537_v20 = vmax.f32 %v1505_v62, 0.0  ;;  %v1569_v53 = vpack.c.bf16 %v1543_v15, %v1535_v23  ;;  %v3211_v15 = vld [vmem:[%s3284_s2] sm:$0xff]  ;;  %s2188_s2 = smov [#allocation3]  }
 0x1ca   :  { %v1528_v54 = vadd.f32 %v3111_v6, %v1420_v47  ;;  %v1530_v57 = vadd.f32 %v3111_v6, %v1473_v51  ;;  %1762 = vmatprep.mubr.bf16.mxu1 %v3317_v58  ;;  %v1559_v56 = vmax.f32 %v1527_v44, 0.0  ;;  %v1561_v7 = vmax.f32 %v1529_v45, 0.0  ;;  %s2041_s24 = sshll.u32 %s2188_s2, 4  ;;  %s2042_s24 = int_to_ptr.vmem [resolvable:$true] %s2041_s24 }
 0x1cb   :  { %v1571_v36 = vpack.c.bf16 %v1545_v19, %v1537_v20  ;;  %s2161_s25 = scalar_lea.vmem %s2042_s24, 128  ;;  %p2166_p1 = scmp.lt.s32.totalorder %s2042_s24, %s2042_s24 }
 0x1cc   :  { %v1560_v32 = vmax.f32 %v1528_v54, 0.0  ;;  %v1562_v35 = vmax.f32 %v1530_v57, 0.0  ;;  %v1577_v8 = vpack.c.bf16 %v1559_v56, %v1551_v13  ;;  %v1579_v18 = vpack.c.bf16 %v1561_v7, %v1553_v1  ;;  %p2162_p0 = scmp.ne.s32.totalorder %s2042_s24, %s2161_s25  ;;  %p2167_p2 = scmp.lt.s32.totalorder %s2161_s25, %s2161_s25 }
 0x1ce   :  { %v1578_v2 = vpack.c.bf16 %v1560_v32, %v1552_v10  ;;  %v1580_v6 = vpack.c.bf16 %v1562_v35, %v1554_v21  ;;  %v1877_v32 = vpop.permute.xlu0 %1876  ;;  %p2168_p3 = por %p2167_p2, %p2166_p1 }
 0x1cf   :  { %v3215_v23 = vrot.slane %v1877_v32, %v2318_v26 }
 0x1d0   :  { %1699 = vmatprep.subr.bf16.mxu0 %v1578_v2  ;;  %1742 = vmatprep.subr.bf16.mxu1 %v1580_v6  ;;  %p2169_p4 = pnand %p2168_p3, %p2162_p0 }
 0x1d1   :  { %1700 = vmatpush1.bf16.msra.mxu0 %v1577_v8  ;;  %1743 = vmatpush1.bf16.msra.mxu1 %v1579_v18 }
 0x1d2   :  { %1701 = vmatprep.subr.bf16.mxu0 %v1570_v31  ;;  %1744 = vmatprep.subr.bf16.mxu1 %v1572_v12 }
 0x1d5   :  { %1702 = vmatpush1.bf16.msra.mxu0 %v1569_v53  ;;  %1745 = vmatpush1.bf16.msra.mxu1 %v1571_v36 }
 0x1d8   :  { %2142 = vmatmul.mubr.msk.bf16.vlgmr.msra.gmra.mxu0 %vm1256_vm7, %v3141_v5  ;;  %2143 = vmatmul.mubr.msk.bf16.vlgmr.msra.gmra.mxu1 %vm1256_vm7, %v3141_v5 }
 0x287   :  { %v1635_v11 = vpop.f32.mrf.mxu0 }
 0x288   :  { %v1636_v59 = vadd.f32 %v1635_v11, %v3183_v38 }
 0x289   :  { %v1678_v60 = vpop.f32.mrf.mxu1  ;;  %v1637_v24 = vpop.f32.mrf.mxu0 }
 0x28a   :  { %v1679_v30 = vadd.f32 %v1678_v60, %v3183_v38  ;;  %v1638_v46 = vadd.f32 %v1637_v24, %v3183_v38  ;;  %v1773_v9 = vmax.f32 %v1636_v59, 0.0 }
 0x28b   :  { %v1680_v61 = vpop.f32.mrf.mxu1  ;;  %v1639_v29 = vpop.f32.mrf.mxu0 }
 0x28c   :  { %v1681_v28 = vadd.f32 %v1680_v61, %v3183_v38  ;;  %v1640_v5 = vadd.f32 %v1639_v29, %v3186_v39  ;;  %v1775_v41 = vmax.f32 %v1679_v30, 0.0  ;;  %v1774_v43 = vmax.f32 %v1638_v46, 0.0 }
 0x28d   :  { %v1682_v48 = vpop.f32.mrf.mxu1  ;;  %v1641_v40 = vpop.f32.mrf.mxu0  ;;  %v1801_v51 = vmul.f32 %v3194_v55, %v1773_v9  ;;  %v1955_v29 = vrot.slane %v3211_v15, %v2318_v26  ;;  %v1959_v9 = vrot.slane %v3211_v15, %v2344_v33 }
 0x28e   :  { %v1683_v42 = vadd.f32 %v1682_v48, %v3186_v39  ;;  %v1781_v49 = vmax.f32 %v1640_v5, 0.0  ;;  %v1642_v50 = vadd.f32 %v1641_v40, %v3186_v39  ;;  %v1776_v44 = vmax.f32 %v1681_v28, 0.0 }
 0x28f   :  { %v1684_v52 = vpop.f32.mrf.mxu1  ;;  %v1803_v27 = vmul.f32 %v3194_v55, %v1775_v41  ;;  %v1802_v3 = vmul.f32 %v3194_v55, %v1774_v43  ;;  %v3318_v41 = vld [vmem:[#allocation11_spill] sm:$0xff] }
 0x290   :  { %v1783_v45 = vmax.f32 %v1683_v42, 0.0  ;;  %v1685_v47 = vadd.f32 %v1684_v52, %v3186_v39  ;;  %v1809_v58 = vmul.f32 %v3196_v37, %v1781_v49  ;;  %v1782_v16 = vmax.f32 %v1642_v50, 0.0 }
 0x291   :  { %v1804_v57 = vmul.f32 %v3194_v55, %v1776_v44  ;;  %v1963_v42 = vrot.slane %v3211_v15, %v3318_v41 }
 0x292   :  { %v1811_v63 = vmul.f32 %v3196_v37, %v1783_v45  ;;  %v1784_v0 = vmax.f32 %v1685_v47, 0.0  ;;  %v1817_v22 = vadd.f32 %v1809_v58, %v1801_v51  ;;  %v1810_v54 = vmul.f32 %v3196_v37, %v1782_v16 }
 0x294   :  { %v1831_v4 = vadd.f32 %v1811_v63, %v1803_v27  ;;  %v1812_v34 = vmul.f32 %v3196_v37, %v1784_v0  ;;  %v1818_v56 = vrot.slane %v1817_v22, 4  ;;  %v1824_v7 = vadd.f32 %v1810_v54, %v1802_v3 }
 0x296   :  { %v1832_v10 = vrot.slane %v1831_v4, 4  ;;  %v1838_v21 = vadd.f32 %v1812_v34, %v1804_v57  ;;  %v1819_v35 = vadd.f32 %v1818_v56, %v1817_v22  ;;  %v1825_v25 = vrot.slane %v1824_v7, 4 }
 0x298   :  { %v1833_v62 = vadd.f32 %v1832_v10, %v1831_v4  ;;  %v1839_v13 = vrot.slane %v1838_v21, 4  ;;  %v1721_v1 = vpop.f32.mrf.mxu0  ;;  %v1764_v14 = vpop.f32.mrf.mxu1  ;;  %v1820_v17 = vrot.slane %v1819_v35, 2  ;;  %v1826_v2 = vadd.f32 %v1825_v25, %v1824_v7 }
 0x299   :  { %v1722_v6 = vadd.f32 %v1721_v1, %v3183_v38  ;;  %v1765_v18 = vadd.f32 %v1764_v14, %v3183_v38 }
 0x29a   :  { %v1834_v19 = vrot.slane %v1833_v62, 2  ;;  %v1840_v8 = vadd.f32 %v1839_v13, %v1838_v21  ;;  %v1723_v31 = vpop.f32.mrf.mxu0  ;;  %v1766_v12 = vpop.f32.mrf.mxu1  ;;  %v1821_v20 = vadd.f32 %v1820_v17, %v1819_v35  ;;  %v1827_v53 = vrot.slane %v1826_v2, 2 }
 0x29b   :  { %v1777_v36 = vmax.f32 %v1722_v6, 0.0  ;;  %v1724_v60 = vadd.f32 %v1723_v31, %v3183_v38  ;;  %v1767_v24 = vadd.f32 %v1766_v12, %v3183_v38  ;;  %v1779_v40 = vmax.f32 %v1765_v18, 0.0 }
 0x29c   :  { %v1835_v11 = vadd.f32 %v1834_v19, %v1833_v62  ;;  %v1841_v59 = vrot.slane %v1840_v8, 2  ;;  %v1725_v30 = vpop.f32.mrf.mxu0  ;;  %v1768_v46 = vpop.f32.mrf.mxu1  ;;  %v1822_v61 = vrot.slane %v1821_v20, 1  ;;  %v1828_v28 = vadd.f32 %v1827_v53, %v1826_v2 }
 0x29d   :  { %v1726_v38 = vadd.f32 %v1725_v30, %v3186_v39  ;;  %v1769_v50 = vadd.f32 %v1768_v46, %v3186_v39  ;;  %v1805_v26 = vmul.f32 %v3194_v55, %v1777_v36  ;;  %v1778_v45 = vmax.f32 %v1724_v60, 0.0 }
 0x29e   :  { %v1836_v5 = vrot.slane %v1835_v11, 1  ;;  %v1842_v48 = vadd.f32 %v1841_v59, %v1840_v8  ;;  %v1823_v43 = vadd.f32 %v1822_v61, %v1821_v20  ;;  %v1829_v49 = vrot.slane %v1828_v28, 1  ;;  %v1727_v52 = vpop.f32.mrf.mxu0  ;;  %v1770_v44 = vpop.f32.mrf.mxu1  ;;  %v3319_v20 = vld [vmem:[#allocation12_spill] sm:$0xff] }
 0x29f   :  { %v1780_v47 = vmax.f32 %v1767_v24, 0.0  ;;  %v1785_v58 = vmax.f32 %v1726_v38, 0.0  ;;  %v1787_v16 = vmax.f32 %v1769_v50, 0.0  ;;  %v1728_v0 = vadd.f32 %v1727_v52, %v3186_v39 }
 0x2a0   :  { %v1830_v51 = vadd.f32 %v1829_v49, %v1828_v28  ;;  %v1843_v33 = vrot.slane %v1842_v48, 1  ;;  %v3229_v27 = vadd.f32 %v3215_v23, %v1823_v43  ;;  %v1837_v63 = vadd.f32 %v1836_v5, %v1835_v11 }
 0x2a1   :  { %v1771_v3 = vadd.f32 %v1770_v44, %v3186_v39  ;;  %v1807_v54 = vmul.f32 %v3194_v55, %v1779_v40  ;;  %v1813_v57 = vmul.f32 %v3196_v37, %v1785_v58  ;;  %v1815_v4 = vmul.f32 %v3196_v37, %v1787_v16  ;;  %v3320_v44 = vld [vmem:[#allocation7_spill] sm:$0xff]  ;;  %v3322_v58 = vld [vmem:[#allocation9_spill] sm:$0xff] }
 0x2a2   :  { %v3234_v22 = vadd.f32 %v3215_v23, %v1830_v51  ;;  %v1806_v34 = vmul.f32 %v3194_v55, %v1778_v45  ;;  %v1808_v56 = vmul.f32 %v3194_v55, %v1780_v47  ;;  %v1786_v7 = vmax.f32 %v1728_v0, 0.0  ;;  %v3321_v45 = vld [vmem:[#allocation6_spill] sm:$0xff] }
 0x2a3   :  { %v1788_v10 = vmax.f32 %v1771_v3, 0.0  ;;  %v1844_v32 = vadd.f32 %v1843_v33, %v1842_v48  ;;  %v1845_v35 = vadd.f32 %v1813_v57, %v1805_v26  ;;  %v1859_v39 = vadd.f32 %v1815_v4, %v1807_v54 }
 0x2a4   :  { %v1993_v21 = vsub.f32 %v3234_v22, %v1959_v9  ;;  %v1992_v25 = vsub.f32 %v3229_v27, %v1955_v29  ;;  %v3244_v62 = vadd.f32 %v3215_v23, %v1837_v63  ;;  %v1814_v13 = vmul.f32 %v3196_v37, %v1786_v7 }
 0x2a5   :  { %v1816_v1 = vmul.f32 %v3196_v37, %v1788_v10  ;;  %v1846_v14 = vrot.slane %v1845_v35, 4  ;;  %v1860_v17 = vrot.slane %v1859_v39, 4  ;;  %v2187_v19 = vmov 1966171168  }
 0x2a6   :  { %v2001_v2 = vmul.f32 %v1993_v21, %v1993_v21  ;;  %v1852_v55 = vadd.f32 %v1814_v13, %v1806_v34  ;;  %v1904_v8 = vunpack.c.l.s4 %v2187_v19  ;;  %v1886_v18 = vadd.f32 %v3215_v23, %v1844_v32  ;;  %v3323_v32 = vld [vmem:[#allocation8_spill] sm:$0xff] }
 0x2a7   :  { %v1866_v6 = vadd.f32 %v1816_v1, %v1808_v56  ;;  %v1847_v31 = vadd.f32 %v1846_v14, %v1845_v35  ;;  %v1861_v12 = vadd.f32 %v1860_v17, %v1859_v39  ;;  %v1967_v53 = vrot.slane %v3211_v15, %v3319_v20  ;;  %v3324_v39 = vld [vmem:[#allocation10_spill] sm:$0xff] }
 0x2a8   :  { %v2000_v36 = vmul.f32 %v1992_v25, %v1992_v25  ;;  %v1853_v11 = vrot.slane %v1852_v55, 4  ;;  %v1994_v60 = vsub.f32 %v3244_v62, %v1963_v42  ;;  %v2010_v61 = vsel %vm2008_vm8, %v2001_v2, 0.0 }
 0x2a9   :  { %v1867_v59 = vrot.slane %v1866_v6, 4  ;;  %v1848_v37 = vrot.slane %v1847_v31, 2  ;;  %v1862_v24 = vrot.slane %v1861_v12, 2  ;;  %v1905_v29 = vunpack.c.0.s8 %v1904_v8 }
 0x2aa   :  { %v1854_v30 = vadd.f32 %v1853_v11, %v1852_v55  ;;  %v1995_v5 = vsub.f32 %v1886_v18, %v1967_v53  ;;  %v2002_v41 = vmul.f32 %v1994_v60, %v1994_v60  ;;  %v2009_v43 = vsel %vm2008_vm8, %v2000_v36, 0.0 }
 0x2ab   :  { %v1868_v46 = vadd.f32 %v1867_v59, %v1866_v6  ;;  %v1849_v28 = vadd.f32 %v1848_v37, %v1847_v31  ;;  %v1863_v9 = vadd.f32 %v1862_v24, %v1861_v12  ;;  %v2011_v50 = vadd.f32 %v2010_v61, %v2009_v43 }
 0x2ac   :  { %v1855_v48 = vrot.slane %v1854_v30, 2  ;;  %v1971_v26 = vrot.slane %v3211_v15, %v3320_v44  ;;  %v1908_v47 = vsub.s32 %v1905_v29, %v3321_v45  ;;  %v1979_v16 = vrot.slane %v3211_v15, %v3322_v58 }
 0x2ad   :  { %v1869_v40 = vrot.slane %v1868_v46, 2  ;;  %v1850_v49 = vrot.slane %v1849_v28, 1  ;;  %v1864_v38 = vrot.slane %v1863_v9, 1  ;;  %v2003_v63 = vmul.f32 %v1995_v5, %v1995_v5 }
 0x2ae   :  { %v1856_v42 = vadd.f32 %v1855_v48, %v1854_v30  ;;  %v2012_v54 = vsel %vm2008_vm8, %v2002_v41, 0.0  ;;  %v1899_v57 = vcombine.low %v3229_v27, %v3234_v22  ;;  %v1900_v7 = vcombine.low %v3244_v62, %v1886_v18 }
 0x2af   :  { %v1870_v52 = vadd.f32 %v1869_v40, %v1868_v46  ;;  %v1851_v51 = vadd.f32 %v1850_v49, %v1849_v28  ;;  %v1865_v33 = vadd.f32 %v1864_v38, %v1863_v9  ;;  %v2013_v56 = vadd.f32 %v2012_v54, %v2011_v50 }
 0x2b0   :  { %v1857_v0 = vrot.slane %v1856_v42, 1  ;;  %v1975_v35 = vrot.slane %v3211_v15, %v3323_v32  ;;  %v1983_v25 = vrot.slane %v3211_v15, %v3324_v39  ;;  %v2014_v14 = vsel %vm2008_vm8, %v2003_v63, 0.0 }
 0x2b1   :  { %v1871_v3 = vrot.slane %v1870_v52, 1  ;;  %v1887_v4 = vadd.f32 %v3215_v23, %v1851_v51  ;;  %v1889_v34 = vadd.f32 %v3215_v23, %v1865_v33  ;;  %v2015_v2 = vadd.f32 %v2014_v14, %v2013_v56 }
 0x2b2   :  { %v1858_v10 = vadd.f32 %v1857_v0, %v1856_v42  ;;  %v1909_v55 = vrot.slane %v1899_v57, %v1908_v47  ;;  %v1916_v62 = vrot.slane %v1900_v7, %v1908_v47 }
 0x2b3   :  { %v1872_v21 = vadd.f32 %v1871_v3, %v1870_v52  ;;  %v1996_v13 = vsub.f32 %v1887_v4, %v1971_v26  ;;  %v1998_v22 = vsub.f32 %v1889_v34, %v1979_v16 }
 0x2b4   :  { %v1888_v1 = vadd.f32 %v3215_v23, %v1858_v10  ;;  %v1931_v11 = vcombine.low %v1909_v55, %v1916_v62 }
 0x2b5   :  { %v1890_v27 = vadd.f32 %v3215_v23, %v1872_v21  ;;  %v2004_v17 = vmul.f32 %v1996_v13, %v1996_v13  ;;  %v2006_v15 = vmul.f32 %v1998_v22, %v1998_v22 }
 0x2b6   :  { %v1997_v19 = vsub.f32 %v1888_v1, %v1975_v35  ;;  %v1901_v18 = vcombine.low %v1887_v4, %v1888_v1  ;;  %v1939_v46 = vrot.slane %v1931_v11, %v1908_v47 }
 0x2b7   :  { %v1902_v6 = vcombine.low %v1889_v34, %v1890_v27  ;;  %v1999_v8 = vsub.f32 %v1890_v27, %v1983_v25  ;;  %v2016_v31 = vsel %vm2008_vm8, %v2004_v17, 0.0  ;;  %v2020_v24 = vsel %vm2008_vm8, %v2006_v15, 0.0 }
 0x2b8   :  { %v2005_v12 = vmul.f32 %v1997_v19, %v1997_v19  ;;  %v2017_v20 = vadd.f32 %v2016_v31, %v2015_v2  ;;  %v1923_v53 = vrot.slane %v1901_v18, %v1908_v47 }
 0x2b9   :  { %v1930_v36 = vrot.slane %v1902_v6, %v1908_v47  ;;  %v2007_v23 = vmul.f32 %v1999_v8, %v1999_v8 }
 0x2ba   :  { %v2018_v59 = vsel %vm2008_vm8, %v2005_v12, 0.0 }
 0x2bb   :  { %v2019_v60 = vadd.f32 %v2018_v59, %v2017_v20  ;;  %v1932_v37 = vcombine.low %v1923_v53, %v1930_v36  ;;  %v2022_v29 = vsel %vm2008_vm8, %v2007_v23, 0.0 }
 0x2bd   :  { %v2021_v30 = vadd.f32 %v2020_v24, %v2019_v60  ;;  %v1946_v61 = vrot.slane %v1932_v37, %v1908_v47 }
 0x2bf   :  { %v2023_v28 = vadd.f32 %v2022_v29, %v2021_v30  ;;  %v1947_v9 = vcombine.low %v1939_v46, %v1946_v61 }
 0x2c1   :  { %2024 = vadd.xlane.f32.xlu1 %v2023_v28  ;;  %1949 = vst [vmem:[#allocation3] sm:$0xff] %v1947_v9 }
 0x2c2   :  { %2172 = shalt.err (!%p2169_p4)
}
 0x2c3   :  { %2044 = dma.vmem_to_hbm [thread:$0]  %s2042_s24, 128, %s3294_s12, [#allocation4]  }
 0x34a   :  { %v2025_v5 = vpop.xlane.xlu1 %2024 }
 0x34b   :  { %v2026_v48 = vrot.slane %v2025_v5, 4 }
 0x34d   :  { %v2027_v40 = vadd.f32 %v2026_v48, %v2025_v5 }
 0x34f   :  { %v2028_v41 = vrot.slane %v2027_v40, 2 }
 0x351   :  { %v2029_v43 = vadd.f32 %v2028_v41, %v2027_v40 }
 0x353   :  { %v2030_v49 = vrot.slane %v2029_v43, 1 }
 0x355   :  { %v2031_v38 = vadd.f32 %v2030_v49, %v2029_v43 }
 0x357   :  { %2144 = vpush %v2031_v38 }
 0x388   :  { %s2145_s28 = spop %2144 }
 0x389   :  { %v2033_v50 = vstv %s2145_s28 }
 0x38a   :  { %2034 = vst [vmem:[%s3295_s13] sm:$0x1] %v2033_v50 }
 0x38b   :  { %2181 = dma.done.wait [#allocation4], 128  }
 0x38c   :  { %2182 = vsyncadd [#allocation4], 4294967168 }
 0x38d   :  { %2052 = vsyncpa [#allocation4], 1 }

</bundles_post_ra>
